<compile_context>
chip_gen: v5e
topology: v5e:2x2
jax: 0.10.0
libtpu: 0.0.40
codegen_flags: <defaults>
</compile_context>

<pallas_src>
import functools

import jax
import jax.numpy as jnp
from jax.experimental import pallas as pl
from jax.experimental.pallas import tpu as pltpu


def _round_up(x, m):
    return ((x + m - 1) // m) * m


# ---------------------------------------------------------------------------
# Fused kernel: conv (all window sizes, merged filter bank) + bias + ReLU +
# masked max-pool + concat + linear + log-softmax, one batch tile per grid step.
# Embedding gather happens outside (XLA gather); x_ref is the embedded sequence.
# ---------------------------------------------------------------------------
def _fused_cnn_kernel(x_ref, cw_ref, cb_ref, gw_ref, gb_ref, mask_ref, o_ref, *,
                      ws_max, t_out):
    b_t, l_ext, e = x_ref.shape           # batch tile, extended seq len, emb dim
    f_pad = cw_ref.shape[1]               # padded total filter count (128-mult)

    x = x_ref[...]                        # (b_t, l_ext, e), matmul dtype
    cw = cw_ref[...]                      # (ws_max*e, f_pad), matmul dtype

    # Merged-filter-bank conv: ws_max small MXU dots accumulated in f32.
    # Rows of cw beyond a group's window size are zero, so every group's conv is
    # computed exactly; no im2col concat / lane relayout needed.
    acc = jnp.zeros((b_t * t_out, f_pad), jnp.float32)
    for j in range(ws_max):
        xj = x[:, j:j + t_out, :].reshape(b_t * t_out, e)
        acc = acc + jnp.dot(xj, cw[j * e:(j + 1) * e, :],
                            preferred_element_type=jnp.float32)
    acc = jnp.maximum(acc + cb_ref[...], 0.0)                    # bias + ReLU (f32)

    # Zero the conv positions that are out of range for each window group
    # (exact: ReLU output >= 0, so a masked 0 never wins the max), then max-pool.
    acc = acc.reshape(b_t, t_out, f_pad) * mask_ref[...][None]
    # TODO(synk): nn.Dropout is identity at inference; training-mode stochastic
    # dropout is not modeled here.
    feats = jnp.max(acc, axis=1)                                 # (b_t, f_pad)

    # Classifier + log-softmax.  Padded class lanes have zero weight columns and
    # a -1e30 bias, so they drop out of the softmax exactly.
    z = jnp.dot(feats.astype(gw_ref.dtype), gw_ref[...],
                preferred_element_type=jnp.float32) + gb_ref[...]   # (b_t, c_pad)
    m = jnp.max(z, axis=-1, keepdims=True)
    lse = jnp.log(jnp.sum(jnp.exp(z - m), axis=-1, keepdims=True)) + m
    o_ref[...] = (z - lse).astype(o_ref.dtype)


# ---------------------------------------------------------------------------
# Parameter packing: merge filter banks along F (zero K rows for the shorter
# windows), pad F_total and C up to 128 lanes; padded class bias lanes = -1e30.
# ---------------------------------------------------------------------------
def pack_params(params, window_sizes, n_filters, n_classes):
    V, E = params["emb"].shape
    ws_max = max(window_sizes)
    f_total = sum(n_filters)
    f_pad = _round_up(f_total, 128)
    c_pad = _round_up(n_classes, 128)

    conv_w = jnp.zeros((ws_max * E, f_pad), jnp.float32)
    conv_b = jnp.zeros((1, f_pad), jnp.float32)
    off = 0
    for ws, nf in zip(window_sizes, n_filters):
        conv_w = conv_w.at[: ws * E, off:off + nf].set(
            params[f"conv_w_{ws}"].reshape(ws * E, nf))
        conv_b = conv_b.at[0, off:off + nf].set(params[f"conv_b_{ws}"])
        off += nf

    gen_w = jnp.zeros((f_pad, c_pad), jnp.float32)
    gen_w = gen_w.at[:f_total, :n_classes].set(params["gen_w"])
    gen_b = jnp.full((1, c_pad), -1e30, jnp.float32)   # pad lanes excluded from softmax
    gen_b = gen_b.at[0, :n_classes].set(params["gen_b"])

    return {"emb": params["emb"].astype(jnp.float32),
            "conv_w": conv_w, "conv_b": conv_b, "gen_w": gen_w, "gen_b": gen_b}


# ---------------------------------------------------------------------------
# Forward: XLA embedding gather + zero pad, one fused pallas_call over batch
# tiles, slice the real classes.
# ---------------------------------------------------------------------------
def cnn_classifier_forward(packed, token_ids, *, window_sizes, n_filters, n_classes,
                           b_tile=64, matmul_dtype=jnp.bfloat16):
    emb = packed["emb"]
    V, E = emb.shape
    B, L = token_ids.shape
    ws_max = max(window_sizes)
    ws_min = min(window_sizes)
    l_pad = max(L, ws_max)                 # torch pads short sequences to max window
    l_ext = l_pad + ws_max - ws_min        # extra zero tail so the shared conv covers
                                           # every window's valid positions in-bounds
    t_out = l_pad - ws_min + 1             # shared number of conv positions
    f_pad = packed["conv_w"].shape[1]
    c_pad = packed["gen_w"].shape[1]

    b_tile = max(8, min(b_tile, _round_up(B, 8)))     # always a multiple of 8
    b_pad = _round_up(B, b_tile)

    # Embedding gather (XLA) + zero padding, stored in the MXU operand dtype so
    # the activation tile DMA is half-width when bf16 is used.
    x = emb[token_ids.astype(jnp.int32)].astype(matmul_dtype)           # (B, L, E)
    x_full = jnp.zeros((b_pad, l_ext, E), matmul_dtype)
    x_full = x_full.at[:B, :L, :].set(x)

    conv_w = packed["conv_w"].astype(matmul_dtype)
    gen_w = packed["gen_w"].astype(matmul_dtype)

    # Per-window pool-validity mask, built once here (not per grid step).
    lane = jnp.arange(f_pad, dtype=jnp.int32)
    limit = jnp.full((f_pad,), -1, jnp.int32)
    off = 0
    for ws, nf in zip(window_sizes, n_filters):
        limit = jnp.where((lane >= off) & (lane < off + nf), l_pad - ws, limit)
        off += nf
    mask = (jnp.arange(t_out, dtype=jnp.int32)[:, None]
            <= limit[None, :]).astype(jnp.float32)                      # (t_out, f_pad)

    kernel = functools.partial(_fused_cnn_kernel, ws_max=ws_max, t_out=t_out)

    itemsize = jnp.dtype(matmul_dtype).itemsize
    flops = 2 * b_pad * t_out * ws_max * E * f_pad + 2 * b_pad * f_pad * c_pad
    bytes_accessed = (b_pad * l_ext * E * itemsize
                      + (ws_max * E * f_pad + f_pad * c_pad) * itemsize
                      + (f_pad + c_pad + t_out * f_pad) * 4
                      + b_pad * c_pad * 4)
    # VMEM budget: double-buffered operands + f32 intermediates, 2x headroom,
    # capped well below v7x's 64 MiB physical per-TC VMEM.
    vmem_needed = (2 * (b_tile * l_ext * E * itemsize
                        + (ws_max * E * f_pad + f_pad * c_pad) * itemsize
                        + (f_pad + c_pad + t_out * f_pad) * 4
                        + b_tile * c_pad * 4)
                   + 4 * (b_tile * t_out * (f_pad + 2 * E)
                          + b_tile * (f_pad + 4 * c_pad)) * 4)
    vmem_limit = int(min(max(2 * vmem_needed, 16 << 20), 48 << 20))

    out = pl.pallas_call(
        kernel,
        out_shape=jax.ShapeDtypeStruct((b_pad, c_pad), jnp.float32),
        grid=(b_pad // b_tile,),
        in_specs=[
            pl.BlockSpec((b_tile, l_ext, E), lambda i: (i, 0, 0)),   # embedded tokens
            pl.BlockSpec((ws_max * E, f_pad), lambda i: (0, 0)),     # merged conv W
            pl.BlockSpec((1, f_pad), lambda i: (0, 0)),              # merged conv b
            pl.BlockSpec((f_pad, c_pad), lambda i: (0, 0)),          # classifier W
            pl.BlockSpec((1, c_pad), lambda i: (0, 0)),              # classifier b (pad=-1e30)
            pl.BlockSpec((t_out, f_pad), lambda i: (0, 0)),          # pool-validity mask
        ],
        out_specs=pl.BlockSpec((b_tile, c_pad), lambda i: (i, 0)),   # lane-dense (128)
        compiler_params=pltpu.CompilerParams(
            dimension_semantics=("parallel",), vmem_limit_bytes=vmem_limit),
        cost_estimate=pl.CostEstimate(flops=flops,
                                      transcendentals=b_pad * c_pad,
                                      bytes_accessed=int(bytes_accessed)),
    )(x_full, conv_w, packed["conv_b"], gen_w, packed["gen_b"], mask)

    return out[:B, :n_classes]


# ---------------------------------------------------------------------------
# Deterministic parameter init (shapes dictated by the module) + pure-JAX ref.
# ---------------------------------------------------------------------------
def init_params(key, input_size, word_vec_size, n_classes, window_sizes, n_filters):
    params = {}
    keys = list(jax.random.split(key, 1 + 2 * len(window_sizes) + 2))
    params["emb"] = jax.random.normal(
        keys.pop(0), (input_size, word_vec_size), dtype=jnp.float32) * 0.1
    for ws, nf in zip(window_sizes, n_filters):
        params[f"conv_w_{ws}"] = jax.random.normal(
            keys.pop(0), (ws, word_vec_size, nf), dtype=jnp.float32) * 0.1
        params[f"conv_b_{ws}"] = jax.random.normal(
            keys.pop(0), (nf,), dtype=jnp.float32) * 0.1
    params["gen_w"] = jax.random.normal(
        keys.pop(0), (sum(n_filters), n_classes), dtype=jnp.float32) * 0.1
    params["gen_b"] = jax.random.normal(
        keys.pop(0), (n_classes,), dtype=jnp.float32) * 0.1
    return params


def reference_forward(params, token_ids, window_sizes, n_filters):
    hp = jax.lax.Precision.HIGHEST
    x = params["emb"][token_ids]                                   # (B, L, E)
    B, L, E = x.shape
    ws_max = max(window_sizes)
    if ws_max > L:
        x = jnp.concatenate([x, jnp.zeros((B, ws_max - L, E), x.dtype)], axis=1)
    l_pad = x.shape[1]
    outs = []
    for ws, nf in zip(window_sizes, n_filters):
        w, b = params[f"conv_w_{ws}"], params[f"conv_b_{ws}"]
        t = l_pad - ws + 1
        conv = jnp.zeros((B, t, nf), jnp.float32)
        for j in range(ws):
            conv = conv + jnp.einsum("ble,ef->blf", x[:, j:j + t, :], w[j], precision=hp)
        conv = jnp.maximum(conv + b, 0.0)
        outs.append(jnp.max(conv, axis=1))
    feats = jnp.concatenate(outs, axis=-1)
    z = jnp.dot(feats, params["gen_w"], precision=hp) + params["gen_b"]
    return jax.nn.log_softmax(z, axis=-1)


if __name__ == "__main__":
    input_size = 50        # vocab size
    word_vec_size = 32     # embedding dim
    n_classes = 5
    window_sizes = [3, 4, 5]
    n_filters = [8, 8, 8]
    batch = 2
    seq_len = 8

    key = jax.random.PRNGKey(0)
    pkey, xkey = jax.random.split(key)
    params = init_params(pkey, input_size, word_vec_size, n_classes,
                         window_sizes, n_filters)
    token_ids = jax.random.randint(xkey, (batch, seq_len), 0, input_size,
                                   dtype=jnp.int32)

    packed = pack_params(params, window_sizes, n_filters, n_classes)
    ref = reference_forward(params, token_ids, window_sizes, n_filters)

    # f32 MXU-operand path: tight match against the pure-JAX / torch-style ref.
    fwd_f32 = jax.jit(functools.partial(
        cnn_classifier_forward, window_sizes=tuple(window_sizes),
        n_filters=tuple(n_filters), n_classes=n_classes,
        matmul_dtype=jnp.float32))
    out_f32 = jax.block_until_ready(fwd_f32(packed, token_ids))
    assert out_f32.shape == (batch, n_classes)
    assert bool(jnp.allclose(out_f32, ref, atol=1e-3, rtol=1e-3))

    # bf16 MXU-operand path (performance default; f32 accumulation).
    fwd = jax.jit(functools.partial(
        cnn_classifier_forward, window_sizes=tuple(window_sizes),
        n_filters=tuple(n_filters), n_classes=n_classes))
    log_probs = jax.block_until_ready(fwd(packed, token_ids))

    assert log_probs.shape == (batch, n_classes)
    assert bool(jnp.all(jnp.isfinite(log_probs)))
    # rows of a log-softmax must exp-sum to 1
    assert bool(jnp.allclose(jnp.sum(jnp.exp(log_probs), axis=-1), 1.0, atol=1e-5))
    # close to the f32 reference even with bf16 MXU operands
    assert bool(jnp.allclose(log_probs, ref, atol=2e-2, rtol=2e-2))

    print("KERNEL_OK")
</pallas_src>

<mosaic_0001>
module attributes {stable_mosaic.version = 11 : i64} {
  func.func @_fused_cnn_kernel(%arg0: i32, %arg1: memref<8x10x32xf32, #tpu.memory_space<vmem>>, %arg2: memref<160x128xf32, #tpu.memory_space<vmem>>, %arg3: memref<1x128xf32, #tpu.memory_space<vmem>>, %arg4: memref<128x128xf32, #tpu.memory_space<vmem>>, %arg5: memref<1x128xf32, #tpu.memory_space<vmem>>, %arg6: memref<6x128xf32, #tpu.memory_space<vmem>>, %arg7: memref<8x128xf32, #tpu.memory_space<vmem>>) attributes {dimension_semantics = [#tpu.dimension_semantics<parallel>], iteration_bounds = array<i64: 1>, scalar_prefetch = 0 : i64, scratch_operands = 0 : i64, tpu.core_type = #tpu.core_type<tc>, window_params = [{transform_indices = @transform_0, window_bounds = array<i64: 8, 10, 32>}, {pipeline_mode = #tpu.pipeline_mode<synchronous>, transform_indices = @transform_1, window_bounds = array<i64: 160, 128>}, {pipeline_mode = #tpu.pipeline_mode<synchronous>, transform_indices = @transform_2, window_bounds = array<i64: 1, 128>}, {pipeline_mode = #tpu.pipeline_mode<synchronous>, transform_indices = @transform_3, window_bounds = array<i64: 128, 128>}, {pipeline_mode = #tpu.pipeline_mode<synchronous>, transform_indices = @transform_4, window_bounds = array<i64: 1, 128>}, {pipeline_mode = #tpu.pipeline_mode<synchronous>, transform_indices = @transform_5, window_bounds = array<i64: 6, 128>}, {transform_indices = @transform_6, window_bounds = array<i64: 8, 128>}]} {
    %c0 = arith.constant 0 : index
    %c0_0 = arith.constant 0 : index
    %c0_1 = arith.constant 0 : index
    %0 = vector.load %arg1[%c0, %c0_0, %c0_1] : memref<8x10x32xf32, #tpu.memory_space<vmem>>, vector<8x10x32xf32>
    %c0_2 = arith.constant 0 : index
    %c0_3 = arith.constant 0 : index
    %1 = vector.load %arg2[%c0_2, %c0_3] : memref<160x128xf32, #tpu.memory_space<vmem>>, vector<160x128xf32>
    %cst = arith.constant 0.000000e+00 : f32
    %2 = vector.broadcast %cst : f32 to vector<48x128xf32>
    %3 = vector.extract_strided_slice %0 {offsets = [0, 0, 0], sizes = [8, 6, 32], strides = [1, 1, 1]} : vector<8x10x32xf32> to vector<8x6x32xf32>
    %4 = vector.shape_cast %3 : vector<8x6x32xf32> to vector<48x32xf32>
    %5 = vector.extract_strided_slice %1 {offsets = [0, 0], sizes = [32, 128], strides = [1, 1]} : vector<160x128xf32> to vector<32x128xf32>
    %cst_4 = arith.constant dense<0.000000e+00> : vector<48x128xf32>
    %6 = tpu.matmul %4, %5, %cst_4 {dimension_numbers = #tpu.dot_dimension_numbers<[1], [0], [0], [1], [0, 0, 1, 1], [], []>} : vector<48x32xf32>, vector<32x128xf32>, vector<48x128xf32> -> vector<48x128xf32>
    %7 = arith.addf %2, %6 : vector<48x128xf32>
    %8 = vector.extract_strided_slice %0 {offsets = [0, 1, 0], sizes = [8, 6, 32], strides = [1, 1, 1]} : vector<8x10x32xf32> to vector<8x6x32xf32>
    %9 = vector.shape_cast %8 : vector<8x6x32xf32> to vector<48x32xf32>
    %10 = vector.extract_strided_slice %1 {offsets = [32, 0], sizes = [32, 128], strides = [1, 1]} : vector<160x128xf32> to vector<32x128xf32>
    %cst_5 = arith.constant dense<0.000000e+00> : vector<48x128xf32>
    %11 = tpu.matmul %9, %10, %cst_5 {dimension_numbers = #tpu.dot_dimension_numbers<[1], [0], [0], [1], [0, 0, 1, 1], [], []>} : vector<48x32xf32>, vector<32x128xf32>, vector<48x128xf32> -> vector<48x128xf32>
    %12 = arith.addf %7, %11 : vector<48x128xf32>
    %13 = vector.extract_strided_slice %0 {offsets = [0, 2, 0], sizes = [8, 6, 32], strides = [1, 1, 1]} : vector<8x10x32xf32> to vector<8x6x32xf32>
    %14 = vector.shape_cast %13 : vector<8x6x32xf32> to vector<48x32xf32>
    %15 = vector.extract_strided_slice %1 {offsets = [64, 0], sizes = [32, 128], strides = [1, 1]} : vector<160x128xf32> to vector<32x128xf32>
    %cst_6 = arith.constant dense<0.000000e+00> : vector<48x128xf32>
    %16 = tpu.matmul %14, %15, %cst_6 {dimension_numbers = #tpu.dot_dimension_numbers<[1], [0], [0], [1], [0, 0, 1, 1], [], []>} : vector<48x32xf32>, vector<32x128xf32>, vector<48x128xf32> -> vector<48x128xf32>
    %17 = arith.addf %12, %16 : vector<48x128xf32>
    %18 = vector.extract_strided_slice %0 {offsets = [0, 3, 0], sizes = [8, 6, 32], strides = [1, 1, 1]} : vector<8x10x32xf32> to vector<8x6x32xf32>
    %19 = vector.shape_cast %18 : vector<8x6x32xf32> to vector<48x32xf32>
    %20 = vector.extract_strided_slice %1 {offsets = [96, 0], sizes = [32, 128], strides = [1, 1]} : vector<160x128xf32> to vector<32x128xf32>
    %cst_7 = arith.constant dense<0.000000e+00> : vector<48x128xf32>
    %21 = tpu.matmul %19, %20, %cst_7 {dimension_numbers = #tpu.dot_dimension_numbers<[1], [0], [0], [1], [0, 0, 1, 1], [], []>} : vector<48x32xf32>, vector<32x128xf32>, vector<48x128xf32> -> vector<48x128xf32>
    %22 = arith.addf %17, %21 : vector<48x128xf32>
    %23 = vector.extract_strided_slice %0 {offsets = [0, 4, 0], sizes = [8, 6, 32], strides = [1, 1, 1]} : vector<8x10x32xf32> to vector<8x6x32xf32>
    %24 = vector.shape_cast %23 : vector<8x6x32xf32> to vector<48x32xf32>
    %25 = vector.extract_strided_slice %1 {offsets = [128, 0], sizes = [32, 128], strides = [1, 1]} : vector<160x128xf32> to vector<32x128xf32>
    %cst_8 = arith.constant dense<0.000000e+00> : vector<48x128xf32>
    %26 = tpu.matmul %24, %25, %cst_8 {dimension_numbers = #tpu.dot_dimension_numbers<[1], [0], [0], [1], [0, 0, 1, 1], [], []>} : vector<48x32xf32>, vector<32x128xf32>, vector<48x128xf32> -> vector<48x128xf32>
    %27 = arith.addf %22, %26 : vector<48x128xf32>
    %c0_9 = arith.constant 0 : index
    %c0_10 = arith.constant 0 : index
    %28 = vector.load %arg3[%c0_9, %c0_10] : memref<1x128xf32, #tpu.memory_space<vmem>>, vector<1x128xf32>
    %29 = vector.broadcast %28 : vector<1x128xf32> to vector<48x128xf32>
    %30 = arith.addf %27, %29 : vector<48x128xf32>
    %cst_11 = arith.constant 0.000000e+00 : f32
    %31 = vector.broadcast %cst_11 : f32 to vector<48x128xf32>
    %32 = arith.maximumf %30, %31 : vector<48x128xf32>
    %33 = vector.shape_cast %32 : vector<48x128xf32> to vector<8x6x128xf32>
    %c0_12 = arith.constant 0 : index
    %c0_13 = arith.constant 0 : index
    %34 = vector.load %arg6[%c0_12, %c0_13] : memref<6x128xf32, #tpu.memory_space<vmem>>, vector<6x128xf32>
    %35 = vector.shape_cast %34 : vector<6x128xf32> to vector<1x6x128xf32>
    %36 = vector.broadcast %35 : vector<1x6x128xf32> to vector<8x6x128xf32>
    %37 = arith.mulf %33, %36 : vector<8x6x128xf32>
    %cst_14 = arith.constant dense<0xFF800000> : vector<8x128xf32>
    %38 = vector.multi_reduction <maximumf>, %37, %cst_14 [1] : vector<8x6x128xf32> to vector<8x128xf32>
    %c0_15 = arith.constant 0 : index
    %c0_16 = arith.constant 0 : index
    %39 = vector.load %arg4[%c0_15, %c0_16] : memref<128x128xf32, #tpu.memory_space<vmem>>, vector<128x128xf32>
    %cst_17 = arith.constant dense<0.000000e+00> : vector<8x128xf32>
    %40 = tpu.matmul %38, %39, %cst_17 {dimension_numbers = #tpu.dot_dimension_numbers<[1], [0], [0], [1], [0, 0, 1, 1], [], []>} : vector<8x128xf32>, vector<128x128xf32>, vector<8x128xf32> -> vector<8x128xf32>
    %c0_18 = arith.constant 0 : index
    %c0_19 = arith.constant 0 : index
    %41 = vector.load %arg5[%c0_18, %c0_19] : memref<1x128xf32, #tpu.memory_space<vmem>>, vector<1x128xf32>
    %42 = vector.broadcast %41 : vector<1x128xf32> to vector<8x128xf32>
    %43 = arith.addf %40, %42 : vector<8x128xf32>
    %cst_20 = arith.constant dense<0xFF800000> : vector<8xf32>
    %44 = vector.multi_reduction <maximumf>, %43, %cst_20 [1] : vector<8x128xf32> to vector<8xf32>
    %45 = vector.shape_cast %44 : vector<8xf32> to vector<8x1xf32>
    %46 = vector.broadcast %45 : vector<8x1xf32> to vector<8x128xf32>
    %47 = arith.subf %43, %46 : vector<8x128xf32>
    %48 = math.exp %47 : vector<8x128xf32>
    %cst_21 = arith.constant dense<0.000000e+00> : vector<8xf32>
    %49 = vector.multi_reduction <add>, %48, %cst_21 [1] : vector<8x128xf32> to vector<8xf32>
    %50 = vector.shape_cast %49 : vector<8xf32> to vector<8x1xf32>
    %51 = math.log %50 : vector<8x1xf32>
    %52 = arith.addf %51, %45 : vector<8x1xf32>
    %53 = vector.broadcast %52 : vector<8x1xf32> to vector<8x128xf32>
    %54 = arith.subf %43, %53 : vector<8x128xf32>
    %c0_22 = arith.constant 0 : index
    %c0_23 = arith.constant 0 : index
    %55 = vector.load %arg7[%c0_22, %c0_23] : memref<8x128xf32, #tpu.memory_space<vmem>>, vector<8x128xf32>
    tpu.vector_store %arg7[%c0_22, %c0_23], %54 {strides = array<i32>} : memref<8x128xf32, #tpu.memory_space<vmem>>, vector<8x128xf32>,
    return
  }
  func.func @transform_0(%arg0: i32) -> (i32, i32, i32) {
    %c0_i32 = arith.constant 0 : i32
    %c0_i32_0 = arith.constant 0 : i32
    %c0_i32_1 = arith.constant 0 : i32
    return %arg0, %c0_i32, %c0_i32_0 : i32, i32, i32
  }
  func.func @transform_1(%arg0: i32) -> (i32, i32) {
    %c0_i32 = arith.constant 0 : i32
    %c0_i32_0 = arith.constant 0 : i32
    %c0_i32_1 = arith.constant 0 : i32
    return %c0_i32, %c0_i32_0 : i32, i32
  }
  func.func @transform_2(%arg0: i32) -> (i32, i32) {
    %c0_i32 = arith.constant 0 : i32
    %c0_i32_0 = arith.constant 0 : i32
    %c0_i32_1 = arith.constant 0 : i32
    return %c0_i32, %c0_i32_0 : i32, i32
  }
  func.func @transform_3(%arg0: i32) -> (i32, i32) {
    %c0_i32 = arith.constant 0 : i32
    %c0_i32_0 = arith.constant 0 : i32
    %c0_i32_1 = arith.constant 0 : i32
    return %c0_i32, %c0_i32_0 : i32, i32
  }
  func.func @transform_4(%arg0: i32) -> (i32, i32) {
    %c0_i32 = arith.constant 0 : i32
    %c0_i32_0 = arith.constant 0 : i32
    %c0_i32_1 = arith.constant 0 : i32
    return %c0_i32, %c0_i32_0 : i32, i32
  }
  func.func @transform_5(%arg0: i32) -> (i32, i32) {
    %c0_i32 = arith.constant 0 : i32
    %c0_i32_0 = arith.constant 0 : i32
    %c0_i32_1 = arith.constant 0 : i32
    return %c0_i32, %c0_i32_0 : i32, i32
  }
  func.func @transform_6(%arg0: i32) -> (i32, i32) {
    %c0_i32 = arith.constant 0 : i32
    %c0_i32_0 = arith.constant 0 : i32
    return %arg0, %c0_i32 : i32, i32
  }
}

</mosaic_0001>

<bundles_post_ra>
// kernel: cnn_classifier_forward.1
= control target key start
LH: loop header
LB: loop body
LE: loop exit
PB: predicated region body
PF: predicated region fallthrough
CT: control target
= control target key end

     0   :  { %vm91_vm0 = vcmask 1040384   ;;  %vm92_vm1 = vcmask 1042434   ;;  %vm94_vm2 = vcmask 1044484   ;;  %vm96_vm3 = vcmask 1046534   ;;  %s1901_s1 = inlined_call_operand.vmem [shape: f32[160,128], index: 1, kind: input, shape index: {}]   ;;  %s1902_s0 = inlined_call_operand.vmem [shape: f32[8,10,32], index: 0, kind: input, shape index: {}]   ;;  %s1903_s2 = inlined_call_operand.vmem [shape: f32[1,128], index: 2, kind: input, shape index: {}]   ;;  %s1904_s4 = inlined_call_operand.vmem [shape: f32[1,128], index: 4, kind: input, shape index: {}]   ;;  %s1905_s3 = inlined_call_operand.vmem [shape: f32[128,128], index: 3, kind: input, shape index: {}]   ;;  %s1906_s5 = inlined_call_operand.vmem [shape: f32[6,128], index: 5, kind: input, shape index: {}]   ;;  %s1907_s6 = inlined_call_operand.vmem [shape: f32[8,128], index: 6, kind: output, shape index: {}]  }
   0x1   :  { %v46_v0 = vld [vmem:[%s1901_s1 + $0x38] sm:$0xff]  ;;  %v45_v1 = vld [vmem:[%s1901_s1 + $0x30] sm:$0xff]  ;;  %v1240_v2 = vld [vmem:[%s1902_s0] sm:$0xff]  ;;  %vm215_vm7 = vcmask 261120   ;;  %vm995_vm8 = vcmask 1045504   ;;  %vm1080_vm9 = vcmask 1041409  }
   0x2   :  { %1182 = vmatpush.msra.mxu2 %v46_v0  ;;  %1183 = vmatpush.msra.mxu3 %v46_v0  ;;  %v44_v3 = vld [vmem:[%s1901_s1 + $0x28] sm:$0xff]  ;;  %v1248_v4 = vld [vmem:[%s1902_s0 + $0x10] sm:$0xff]  ;;  %v1253_v5 = vld [vmem:[%s1902_s0 + $0x20] sm:$0xff]  ;;  %v67_v6 = vrot.slane %v1240_v2, 2  ;;  %v68_v7 = vrot.slane %v1240_v2, 4  ;;  %v1128_v12 = vrot.slane %v1240_v2, 9 }
   0x3   :  { %240 = vmatpush.msra.mxu0 %v46_v0  ;;  %v69_v8 = vrot.slane %v1248_v4, 2  ;;  %v43_v9 = vld [vmem:[%s1901_s1 + $0x20] sm:$0xff]  ;;  %v1264_v10 = vld [vmem:[%s1902_s0 + $0x30] sm:$0xff]  ;;  %v72_v11 = vrot.slane %v1253_v5, 4  ;;  %vm93_vm4 = vmor %vm91_vm0, %vm92_vm1  ;;  %v1129_v15 = vrot.slane %v1240_v2, 13  ;;  %v1130_v16 = vrot.slane %v1248_v4, 9 }
   0x4   :  { %1184 = vmatpush.msra.mxu2 %v45_v1  ;;  %1185 = vmatpush.msra.mxu3 %v45_v1  ;;  %vm95_vm5 = vmor %vm93_vm4, %vm94_vm2  ;;  %v100_v13 = vrot.slane %v67_v6, 7  ;;  %v103_v14 = vrot.slane %v68_v7, 7  ;;  %v73_v17 = vrot.slane %v1264_v10, 2  ;;  %v74_v20 = vrot.slane %v1264_v10, 4  ;;  %v1306_v34 = vld [vmem:[%s1902_s0 + $0x50] sm:$0xff]  ;;  %v50_v37 = vld [vmem:[%s1901_s1 + $0x58] sm:$0xff] }
   0x5   :  { %241 = vmatpush.msra.mxu0 %v45_v1  ;;  %vm1279_vm6 = vmor %vm95_vm5, %vm96_vm3  ;;  %v110_v19 = vrot.slane %v69_v8, 7  ;;  %v123_v25 = vrot.slane %v72_v11, 7  ;;  %v70_v29 = vrot.slane %v1248_v4, 4  ;;  %v71_v30 = vrot.slane %v1253_v5, 2  ;;  %v1322_v44 = vld [vmem:[%s1902_s0 + $0x60] sm:$0xff] }
   0x6   :  { %1186 = vmatpush.msra.mxu2 %v44_v3  ;;  %1187 = vmatpush.msra.mxu3 %v44_v3  ;;  %v101_v21 = vsel %vm1279_vm6, %v1128_v12, %v100_v13  ;;  %v102_v22 = vrot.slane %v100_v13, 2  ;;  %v105_v23 = vrot.slane %v103_v14, 2  ;;  %v130_v28 = vrot.slane %v73_v17, 7  ;;  %v1329_v47 = vld [vmem:[%s1902_s0 + $0x40] sm:$0xff] }
   0x7   :  { %242 = vmatpush.msra.mxu0 %v44_v3  ;;  %v111_v24 = vsel %vm1279_vm6, %v1130_v16, %v110_v19  ;;  %178 = vst [vmem:[#allocation1] ss:$4 sm:$0xff] %v101_v21  ;;  %v133_v31 = vrot.slane %v74_v20, 7  ;;  %v125_v32 = vrot.slane %v123_v25, 2  ;;  %v1133_v33 = vrot.slane %v1253_v5, 13 }
   0x8   :  { %1188 = vmatpush.msra.mxu2 %v43_v9  ;;  %1189 = vmatpush.msra.mxu3 %v43_v9  ;;  %v104_v26 = vsel %vm1279_vm6, %v102_v22, %v103_v14  ;;  %v107_v27 = vsel %vm1279_vm6, %v105_v23, %v1129_v15  ;;  %184 = vst [vmem:[#allocation1 + $0x3] ss:$4 sm:$0xff] %v111_v24  ;;  %v112_v35 = vrot.slane %v110_v19, 2  ;;  %v113_v36 = vrot.slane %v70_v29, 7  ;;  %v1364_v14 = vld [vmem:[%s1902_s0 + $0x70] sm:$0xff] }
   0x9   :  { %243 = vmatpush.msra.mxu0 %v43_v9  ;;  %180 = vst [vmem:[#allocation1 + $0x1] ss:$4 sm:$0xff] %v104_v26  ;;  %v1134_v38 = vrot.slane %v1264_v10, 9  ;;  %v1131_v39 = vrot.slane %v1248_v4, 13  ;;  %v1132_v40 = vrot.slane %v1253_v5, 9  ;;  %v120_v41 = vrot.slane %v71_v30, 7 }
   0xa   :  { %182 = vst [vmem:[#allocation1 + $0x2] ss:$4 sm:$0xff] %v107_v27  ;;  %446 = vmatpush.msrb.mxu2 %v50_v37  ;;  %v132_v42 = vrot.slane %v130_v28, 2  ;;  %v1135_v43 = vrot.slane %v1264_v10, 13  ;;  %v114_v45 = vsel %vm1279_vm6, %v112_v35, %v113_v36  ;;  %v115_v46 = vrot.slane %v113_v36, 2 }
   0xb   :  { %v135_v48 = vrot.slane %v133_v31, 2  ;;  %v77_v49 = vrot.slane %v1306_v34, 2  ;;  %v121_v50 = vsel %vm1279_vm6, %v1132_v40, %v120_v41  ;;  %v122_v51 = vrot.slane %v120_v41, 2  ;;  %186 = vst [vmem:[#allocation1 + $0x20] ss:$4 sm:$0xff] %v114_v45 }
   0xc   :  { %v127_v52 = vsel %vm1279_vm6, %v125_v32, %v1133_v33  ;;  %v78_v53 = vrot.slane %v1306_v34, 4  ;;  %v117_v54 = vsel %vm1279_vm6, %v115_v46, %v1131_v39  ;;  %190 = vst [vmem:[#allocation1 + $0x22] ss:$4 sm:$0xff] %v121_v50  ;;  %v131_v55 = vsel %vm1279_vm6, %v1134_v38, %v130_v28 }
   0xd   :  { %v79_v56 = vrot.slane %v1322_v44, 2  ;;  %v124_v57 = vsel %vm1279_vm6, %v122_v51, %v123_v25  ;;  %188 = vst [vmem:[#allocation1 + $0x21] ss:$4 sm:$0xff] %v117_v54  ;;  %v75_v58 = vrot.slane %v1329_v47, 2  ;;  %v134_v59 = vsel %vm1279_vm6, %v132_v42, %v133_v31 }
   0xe   :  { %192 = vst [vmem:[#allocation1 + $0x23] ss:$4 sm:$0xff] %v124_v57  ;;  %v76_v61 = vrot.slane %v1329_v47, 4  ;;  %v137_v62 = vsel %vm1279_vm6, %v135_v48, %v1135_v43  ;;  %v1138_v63 = vrot.slane %v1306_v34, 9  ;;  %v150_v0 = vrot.slane %v77_v49, 7 }
   0xf   :  { %v140_v1 = vrot.slane %v75_v58, 7  ;;  %v153_v3 = vrot.slane %v78_v53, 7  ;;  %v1136_v9 = vrot.slane %v1329_v47, 9  ;;  %v80_v15 = vrot.slane %v1322_v44, 4 }
  0x10   :  { %v143_v12 = vrot.slane %v76_v61, 7  ;;  %v160_v16 = vrot.slane %v79_v56, 7  ;;  %v1137_v21 = vrot.slane %v1329_v47, 13  ;;  %v151_v22 = vsel %vm1279_vm6, %v1138_v63, %v150_v0 }
  0x11   :  { %v193_v60 = vld.sshfl [vmem:[#allocation1] sm:$0xff pattern:$0x73625140]  ;;  %v142_v13 = vrot.slane %v140_v1, 2  ;;  %v152_v23 = vrot.slane %v150_v0, 2  ;;  %v155_v24 = vrot.slane %v153_v3, 2  ;;  %v141_v26 = vsel %vm1279_vm6, %v1136_v9, %v140_v1 }
  0x12   :  { %195 = vst [vmem:[#allocation1] ss:$4 sm:$0xff] %v127_v52  ;;  %1144 = vmatmul.msk.f32.vlgmr.msra.gmra.mxu0 %vm215_vm7, %v193_v60  ;;  %v145_v19 = vrot.slane %v143_v12, 2  ;;  %v1139_v25 = vrot.slane %v1306_v34, 13  ;;  %v81_v27 = vrot.slane %v1364_v14, 2  ;;  %v1140_v28 = vrot.slane %v1322_v44, 9 }
  0x13   :  { %196 = vst [vmem:[#allocation1 + $0x1] ss:$4 sm:$0xff] %v131_v55  ;;  %v144_v32 = vsel %vm1279_vm6, %v142_v13, %v143_v12  ;;  %v82_v33 = vrot.slane %v1364_v14, 4  ;;  %v162_v35 = vrot.slane %v160_v16, 2  ;;  %v163_v36 = vrot.slane %v80_v15, 7 }
  0x14   :  { %197 = vst [vmem:[#allocation1 + $0x2] ss:$4 sm:$0xff] %v134_v59  ;;  %v147_v37 = vsel %vm1279_vm6, %v145_v19, %v1137_v21  ;;  %v154_v38 = vsel %vm1279_vm6, %v152_v23, %v153_v3  ;;  %v157_v39 = vsel %vm1279_vm6, %v155_v24, %v1139_v25  ;;  %v170_v40 = vrot.slane %v81_v27, 7 }
  0x15   :  { %198 = vst [vmem:[#allocation1 + $0x3] ss:$4 sm:$0xff] %v137_v62  ;;  %v194_v31 = vld.sshfl [vmem:[#allocation1 + $0x20] sm:$0xff pattern:$0x73625140]  ;;  %v161_v42 = vsel %vm1279_vm6, %v1140_v28, %v160_v16  ;;  %v173_v43 = vrot.slane %v82_v33, 7  ;;  %v164_v45 = vsel %vm1279_vm6, %v162_v35, %v163_v36 }
  0x16   :  { %202 = vst [vmem:[#allocation1 + $0x23] ss:$4 sm:$0xff] %v151_v22  ;;  %v165_v46 = vrot.slane %v163_v36, 2  ;;  %v1141_v48 = vrot.slane %v1322_v44, 13  ;;  %v1142_v50 = vrot.slane %v1364_v14, 9  ;;  %v172_v51 = vrot.slane %v170_v40, 2 }
  0x17   :  { %199 = vst [vmem:[#allocation1 + $0x20] ss:$4 sm:$0xff] %v141_v26  ;;  %v175_v52 = vrot.slane %v173_v43, 2  ;;  %v1143_v54 = vrot.slane %v1364_v14, 13  ;;  %vm1083_vm10 = vcmask 1043459   ;;  %vm1086_vm11 = vcmask 1045509  }
  0x18   :  { %200 = vst [vmem:[#allocation1 + $0x21] ss:$4 sm:$0xff] %v144_v32  ;;  %v167_v55 = vsel %vm1279_vm6, %v165_v46, %v1141_v48  ;;  %v171_v57 = vsel %vm1279_vm6, %v1142_v50, %v170_v40  ;;  %v174_v60 = vsel %vm1279_vm6, %v172_v51, %v173_v43  ;;  %v1501_v43 = vld [vmem:[%s1902_s0 + $0x18] sm:$0x3]  ;;  %v1516_v51 = vld [vmem:[%s1902_s0 + $0x28] sm:$0x3] }
  0x19   :  { %201 = vst [vmem:[#allocation1 + $0x22] ss:$4 sm:$0xff] %v147_v37  ;;  %v177_v62 = vsel %vm1279_vm6, %v175_v52, %v1143_v54  ;;  %vm1089_vm12 = vcmask 1047559  }
  0x1a   :  { %1145 = vmatmul.msk.f32.gmra.mxu0 %vm215_vm7, %v194_v31 }
  0x1c   :  { %v203_v41 = vld.sshfl [vmem:[#allocation1] sm:$0xff pattern:$0x73625140] }
  0x1d   :  { %1146 = vmatmul.msk.f32.vlgmr.msra.gmra.mxu2 %vm215_vm7, %v203_v41  ;;  %205 = vst [vmem:[#allocation1] ss:$4 sm:$0xff] %v154_v38  ;;  %v1486_v38 = vld [vmem:[%s1902_s0 + $0x8] sm:$0x3] }
  0x1e   :  { %206 = vst [vmem:[#allocation1 + $0x1] ss:$4 sm:$0xff] %v157_v39 }
  0x1f   :  { %207 = vst [vmem:[#allocation1 + $0x2] ss:$4 sm:$0xff] %v161_v42 }
  0x20   :  { %208 = vst [vmem:[#allocation1 + $0x3] ss:$4 sm:$0xff] %v164_v45  ;;  %v204_v59 = vld.sshfl [vmem:[#allocation1 + $0x20] sm:$0xff pattern:$0x73625140] }
  0x21   :  { %209 = vst [vmem:[#allocation1 + $0x20] ss:$4 sm:$0xff] %v167_v55 }
  0x22   :  { %210 = vst [vmem:[#allocation1 + $0x21] ss:$4 sm:$0xff] %v171_v57 }
  0x23   :  { %211 = vst [vmem:[#allocation1 + $0x22] ss:$4 sm:$0xff] %v174_v60 }
  0x24   :  { %212 = vst [vmem:[#allocation1 + $0x23] ss:$4 sm:$0xff] %v177_v62  ;;  %v49_v62 = vld [vmem:[%s1901_s1 + $0x50] sm:$0xff] }
  0x25   :  { %1147 = vmatmul.msk.f32.gmra.mxu2 %vm215_vm7, %v204_v59  ;;  %v1531_v59 = vld [vmem:[%s1902_s0 + $0x38] sm:$0x3] }
  0x26   :  { %447 = vmatpush.msrb.mxu2 %v49_v62 }
  0x27   :  { %v213_v63 = vld.sshfl [vmem:[#allocation1] sm:$0xff pattern:$0x73625140] }
  0x28   :  { %1148 = vmatmul.msk.f32.vlgmr.msra.gmra.mxu3 %vm215_vm7, %v213_v63  ;;  %265 = vst [vmem:[#allocation1 + $0x1] ss:$4 sm:$0xff] %v67_v6  ;;  %v54_v63 = vld [vmem:[%s1901_s1 + $0x78] sm:$0xff] }
  0x29   :  { %267 = vst [vmem:[#allocation1 + $0x2] ss:$4 sm:$0xff] %v68_v7  ;;  %676 = vmatpush.msrb.mxu3 %v54_v63 }
  0x2a   :  { %269 = vst [vmem:[#allocation1 + $0x3] ss:$4 sm:$0xff] %v1248_v4 }
  0x2b   :  { %263 = vst [vmem:[#allocation1] ss:$4 sm:$0xff] %v1240_v2  ;;  %v214_v0 = vld.sshfl [vmem:[#allocation1 + $0x20] sm:$0xff pattern:$0x73625140] }
  0x2c   :  { %271 = vst [vmem:[#allocation1 + $0x20] ss:$4 sm:$0xff] %v69_v8 }
  0x2d   :  { %273 = vst [vmem:[#allocation1 + $0x21] ss:$4 sm:$0xff] %v70_v29 }
  0x2e   :  { %275 = vst [vmem:[#allocation1 + $0x22] ss:$4 sm:$0xff] %v1253_v5 }
  0x2f   :  { %277 = vst [vmem:[#allocation1 + $0x23] ss:$4 sm:$0xff] %v71_v30 }
  0x30   :  { %1149 = vmatmul.msk.f32.gmra.mxu3 %vm215_vm7, %v214_v0  ;;  %v42_v0 = vld [vmem:[%s1901_s1 + $0x18] sm:$0xff] }
  0x31   :  { %324 = vmatpush.msra.mxu1 %v42_v0 }
  0x32   :  { %v1425_v6 = vld.sshfl [vmem:[#allocation1] sm:$0xff pattern:$0x73625140] }
  0x33   :  { %280 = vst [vmem:[#allocation1] ss:$4 sm:$0xff] %v72_v11 }
  0x34   :  { %281 = vst [vmem:[#allocation1 + $0x1] ss:$4 sm:$0xff] %v1264_v10 }
  0x35   :  { %282 = vst [vmem:[#allocation1 + $0x2] ss:$4 sm:$0xff] %v73_v17 }
  0x36   :  { %283 = vst [vmem:[#allocation1 + $0x3] ss:$4 sm:$0xff] %v74_v20  ;;  %v1434_v7 = vld.sshfl [vmem:[#allocation1 + $0x20] sm:$0xff pattern:$0x73625140] }
  0x37   :  { %284 = vst [vmem:[#allocation1 + $0x20] ss:$4 sm:$0xff] %v1329_v47 }
  0x38   :  { %285 = vst [vmem:[#allocation1 + $0x21] ss:$4 sm:$0xff] %v75_v58 }
  0x39   :  { %286 = vst [vmem:[#allocation1 + $0x22] ss:$4 sm:$0xff] %v76_v61 }
  0x3a   :  { %287 = vst [vmem:[#allocation1 + $0x23] ss:$4 sm:$0xff] %v1306_v34 }
  0x3d   :  { %v1442_v8 = vld.sshfl [vmem:[#allocation1] sm:$0xff pattern:$0x73625140] }
  0x3e   :  { %290 = vst [vmem:[#allocation1] ss:$4 sm:$0xff] %v77_v49 }
  0x3f   :  { %291 = vst [vmem:[#allocation1 + $0x1] ss:$4 sm:$0xff] %v78_v53 }
  0x40   :  { %292 = vst [vmem:[#allocation1 + $0x2] ss:$4 sm:$0xff] %v1322_v44 }
  0x41   :  { %293 = vst [vmem:[#allocation1 + $0x3] ss:$4 sm:$0xff] %v79_v56  ;;  %v1451_v11 = vld.sshfl [vmem:[#allocation1 + $0x20] sm:$0xff pattern:$0x73625140] }
  0x42   :  { %294 = vst [vmem:[#allocation1 + $0x20] ss:$4 sm:$0xff] %v80_v15 }
  0x43   :  { %295 = vst [vmem:[#allocation1 + $0x21] ss:$4 sm:$0xff] %v1364_v14 }
  0x44   :  { %296 = vst [vmem:[#allocation1 + $0x22] ss:$4 sm:$0xff] %v81_v27 }
  0x45   :  { %297 = vst [vmem:[#allocation1 + $0x23] ss:$4 sm:$0xff] %v82_v33 }
  0x48   :  { %v1460_v17 = vld.sshfl [vmem:[#allocation1] sm:$0xff pattern:$0x73625140] }
  0x49   :  { %347 = vst.sshfl [vmem:[#allocation1] sm:$0xff pattern:$0x73625140] %v1240_v2 }
  0x4c   :  { %v1463_v20 = vld.sshfl [vmem:[#allocation1 + $0x20] sm:$0xff pattern:$0x73625140] }
  0x4d   :  { %354 = vst.sshfl [vmem:[#allocation1 + $0x20] sm:$0xff pattern:$0x73625140] %v1248_v4 }
  0x50   :  { %v349_v29 = vld [vmem:[#allocation1 + $0x1] ss:$4 sm:$0xff]  ;;  %v351_v30 = vld [vmem:[#allocation1 + $0x2] ss:$4 sm:$0xff]  ;;  %v353_v49 = vld [vmem:[#allocation1 + $0x3] ss:$4 sm:$0xff] }
  0x51   :  { %361 = vst.sshfl [vmem:[#allocation1] sm:$0xff pattern:$0x73625140] %v1253_v5 }
  0x54   :  { %v356_v53 = vld [vmem:[#allocation1 + $0x21] ss:$4 sm:$0xff]  ;;  %v358_v56 = vld [vmem:[#allocation1 + $0x22] ss:$4 sm:$0xff]  ;;  %v360_v58 = vld [vmem:[#allocation1 + $0x23] ss:$4 sm:$0xff] }
  0x55   :  { %365 = vst.sshfl [vmem:[#allocation1 + $0x20] sm:$0xff pattern:$0x73625140] %v1264_v10 }
  0x58   :  { %v362_v61 = vld [vmem:[#allocation1 + $0x1] ss:$4 sm:$0xff]  ;;  %v363_v1 = vld [vmem:[#allocation1 + $0x2] ss:$4 sm:$0xff]  ;;  %v364_v3 = vld [vmem:[#allocation1 + $0x3] ss:$4 sm:$0xff] }
  0x59   :  { %369 = vst.sshfl [vmem:[#allocation1] sm:$0xff pattern:$0x73625140] %v1329_v47 }
  0x5c   :  { %v366_v9 = vld [vmem:[#allocation1 + $0x21] ss:$4 sm:$0xff]  ;;  %v367_v12 = vld [vmem:[#allocation1 + $0x22] ss:$4 sm:$0xff]  ;;  %v368_v13 = vld [vmem:[#allocation1 + $0x23] ss:$4 sm:$0xff] }
  0x5d   :  { %373 = vst.sshfl [vmem:[#allocation1 + $0x20] sm:$0xff pattern:$0x73625140] %v1306_v34 }
  0x60   :  { %v370_v15 = vld [vmem:[#allocation1 + $0x1] ss:$4 sm:$0xff]  ;;  %v371_v16 = vld [vmem:[#allocation1 + $0x2] ss:$4 sm:$0xff]  ;;  %v372_v19 = vld [vmem:[#allocation1 + $0x3] ss:$4 sm:$0xff] }
  0x61   :  { %377 = vst.sshfl [vmem:[#allocation1] sm:$0xff pattern:$0x73625140] %v1322_v44 }
  0x62   :  { %385 = vst [vmem:[#allocation1] ss:$4 sm:$0xff] %v349_v29  ;;  %v48_v29 = vld [vmem:[%s1901_s1 + $0x48] sm:$0xff] }
  0x63   :  { %448 = vmatpush.msrb.mxu2 %v48_v29 }
  0x64   :  { %v374_v21 = vld [vmem:[#allocation1 + $0x21] ss:$4 sm:$0xff]  ;;  %v375_v22 = vld [vmem:[#allocation1 + $0x22] ss:$4 sm:$0xff]  ;;  %v376_v23 = vld [vmem:[#allocation1 + $0x23] ss:$4 sm:$0xff] }
  0x65   :  { %381 = vst.sshfl [vmem:[#allocation1 + $0x20] sm:$0xff pattern:$0x73625140] %v1364_v14 }
  0x66   :  { %393 = vst [vmem:[#allocation1 + $0x20] ss:$4 sm:$0xff] %v358_v56  ;;  %v52_v56 = vld [vmem:[%s1901_s1 + $0x68] sm:$0xff] }
  0x68   :  { %v380_v24 = vld [vmem:[#allocation1 + $0x3] ss:$4 sm:$0xff]  ;;  %v378_v25 = vld [vmem:[#allocation1 + $0x1] ss:$4 sm:$0xff]  ;;  %v379_v26 = vld [vmem:[#allocation1 + $0x2] ss:$4 sm:$0xff] }
  0x69   :  { %391 = vst [vmem:[#allocation1 + $0x3] ss:$4 sm:$0xff] %v356_v53  ;;  %v47_v53 = vld [vmem:[%s1901_s1 + $0x40] sm:$0xff] }
  0x6a   :  { %387 = vst [vmem:[#allocation1 + $0x1] ss:$4 sm:$0xff] %v351_v30  ;;  %v53_v30 = vld [vmem:[%s1901_s1 + $0x70] sm:$0xff]  ;;  %449 = vmatpush.msrb.mxu2 %v47_v53 }
  0x6b   :  { %389 = vst [vmem:[#allocation1 + $0x2] ss:$4 sm:$0xff] %v353_v49  ;;  %v41_v49 = vld [vmem:[%s1901_s1 + $0x10] sm:$0xff]  ;;  %677 = vmatpush.msrb.mxu3 %v53_v30 }
  0x6c   :  { %v382_v27 = vld [vmem:[#allocation1 + $0x21] ss:$4 sm:$0xff]  ;;  %v383_v28 = vld [vmem:[#allocation1 + $0x22] ss:$4 sm:$0xff]  ;;  %v384_v31 = vld [vmem:[#allocation1 + $0x23] ss:$4 sm:$0xff]  ;;  %325 = vmatpush.msra.mxu1 %v41_v49 }
  0x6d   :  { %395 = vst [vmem:[#allocation1 + $0x21] ss:$4 sm:$0xff] %v360_v58  ;;  %678 = vmatpush.msrb.mxu3 %v52_v56 }
  0x6e   :  { %397 = vst [vmem:[#allocation1 + $0x22] ss:$4 sm:$0xff] %v362_v61 }
  0x6f   :  { %399 = vst [vmem:[#allocation1 + $0x23] ss:$4 sm:$0xff] %v363_v1 }
  0x72   :  { %v1472_v32 = vld.sshfl [vmem:[#allocation1] sm:$0xff pattern:$0x73625140] }
  0x73   :  { %402 = vst [vmem:[#allocation1] ss:$4 sm:$0xff] %v364_v3  ;;  %v40_v3 = vld [vmem:[%s1901_s1 + $0x8] sm:$0xff]  ;;  %1156 = vmatmul.msk.f32.vlgmr.msrb.gmra.mxu2 %vm215_vm7, %v1472_v32 }
  0x74   :  { %403 = vst [vmem:[#allocation1 + $0x1] ss:$4 sm:$0xff] %v366_v9  ;;  %v51_v9 = vld [vmem:[%s1901_s1 + $0x60] sm:$0xff]  ;;  %326 = vmatpush.msra.mxu1 %v40_v3 }
  0x75   :  { %404 = vst [vmem:[#allocation1 + $0x2] ss:$4 sm:$0xff] %v367_v12  ;;  %v1576_v12 = vld [vmem:[%s1902_s0 + $0x48] sm:$0x3]  ;;  %679 = vmatpush.msrb.mxu3 %v51_v9 }
  0x76   :  { %405 = vst [vmem:[#allocation1 + $0x3] ss:$4 sm:$0xff] %v368_v13  ;;  %v1474_v33 = vld.sshfl [vmem:[#allocation1 + $0x20] sm:$0xff pattern:$0x73625140] }
  0x77   :  { %406 = vst [vmem:[#allocation1 + $0x20] ss:$4 sm:$0xff] %v370_v15 }
  0x78   :  { %407 = vst [vmem:[#allocation1 + $0x21] ss:$4 sm:$0xff] %v371_v16 }
  0x79   :  { %408 = vst [vmem:[#allocation1 + $0x22] ss:$4 sm:$0xff] %v372_v19 }
  0x7a   :  { %409 = vst [vmem:[#allocation1 + $0x23] ss:$4 sm:$0xff] %v374_v21  ;;  %v1593_v21 = vld [vmem:[%s1902_s0 + $0x58] sm:$0x3] }
  0x7b   :  { %1157 = vmatmul.msk.f32.gmra.mxu2 %vm215_vm7, %v1474_v33 }
  0x7d   :  { %v1476_v35 = vld.sshfl [vmem:[#allocation1] sm:$0xff pattern:$0x73625140] }
  0x7e   :  { %412 = vst [vmem:[#allocation1] ss:$4 sm:$0xff] %v375_v22  ;;  %v39_v22 = vld [vmem:[%s1901_s1] sm:$0xff] }
  0x7f   :  { %413 = vst [vmem:[#allocation1 + $0x1] ss:$4 sm:$0xff] %v376_v23  ;;  %327 = vmatpush.msra.mxu1 %v39_v22 }
  0x80   :  { %414 = vst [vmem:[#allocation1 + $0x2] ss:$4 sm:$0xff] %v378_v25  ;;  %1150 = vmatmul.msk.f32.vlgmr.msra.gmra.mxu1 %vm215_vm7, %v1425_v6 }
  0x81   :  { %415 = vst [vmem:[#allocation1 + $0x3] ss:$4 sm:$0xff] %v379_v26  ;;  %v1478_v36 = vld.sshfl [vmem:[#allocation1 + $0x20] sm:$0xff pattern:$0x73625140] }
  0x82   :  { %416 = vst [vmem:[#allocation1 + $0x20] ss:$4 sm:$0xff] %v380_v24 }
  0x83   :  { %417 = vst [vmem:[#allocation1 + $0x21] ss:$4 sm:$0xff] %v382_v27  ;;  %v1615_v27 = vld [vmem:[%s1902_s0 + $0x68] sm:$0x3]  ;;  %1158 = vmatmul.msk.f32.gmra.mxu2 %vm215_vm7, %v1476_v35 }
  0x84   :  { %418 = vst [vmem:[#allocation1 + $0x22] ss:$4 sm:$0xff] %v383_v28 }
  0x85   :  { %419 = vst [vmem:[#allocation1 + $0x23] ss:$4 sm:$0xff] %v384_v31 }
  0x88   :  { %v1480_v37 = vld.sshfl [vmem:[#allocation1] sm:$0xff pattern:$0x73625140]  ;;  %1151 = vmatmul.msk.f32.gmra.mxu1 %vm215_vm7, %v1434_v7 }
  0x89   :  { %483 = vst.sshfl [vmem:[#allocation1] sm:$0xff pattern:$0x73625140] %v1240_v2 }
  0x8b   :  { %1159 = vmatmul.msk.f32.gmra.mxu2 %vm215_vm7, %v1478_v36 }
  0x8c   :  { %v1488_v39 = vld.sshfl [vmem:[#allocation1 + $0x20] sm:$0xff pattern:$0x73625140] }
  0x8d   :  { %484 = vst.sshfl [vmem:[#allocation1 + $0x20] sm:$0xff pattern:$0x73625140] %v1486_v38 }
  0x90   :  { %v1491_v40 = vld [vmem:[#allocation1 + $0x1] ss:$4 sm:$0xff]  ;;  %v1493_v41 = vld [vmem:[#allocation1 + $0x2] ss:$4 sm:$0xff]  ;;  %v1495_v42 = vld [vmem:[#allocation1 + $0x3] ss:$4 sm:$0xff]  ;;  %1152 = vmatmul.msk.f32.gmra.mxu1 %vm215_vm7, %v1442_v8 }
  0x91   :  { %493 = vst.sshfl [vmem:[#allocation1] sm:$0xff pattern:$0x73625140] %v1248_v4  ;;  %v1162_v28 = vrot.slane %v1491_v40, 9  ;;  %v537_v32 = vrot.slane %v1493_v41, 7  ;;  %v540_v62 = vrot.slane %v1495_v42, 7 }
  0x92   :  { %v1643_v42 = vld [vmem:[%s1902_s0 + $0x78] sm:$0x3] }
  0x93   :  { %v538_v33 = vsel %vm1279_vm6, %v1162_v28, %v537_v32  ;;  %v539_v41 = vrot.slane %v537_v32, 2  ;;  %v542_v29 = vrot.slane %v540_v62, 2  ;;  %1160 = vmatmul.msk.f32.gmra.mxu2 %vm215_vm7, %v1480_v37 }
  0x94   :  { %v1503_v45 = vld [vmem:[#allocation1 + $0x20] ss:$4 sm:$0xff] }
  0x95   :  { %494 = vst.sshfl [vmem:[#allocation1 + $0x20] sm:$0xff pattern:$0x73625140] %v1501_v43  ;;  %v543_v30 = vrot.slane %v1503_v45, 7  ;;  %v541_v45 = vsel %vm1279_vm6, %v539_v41, %v540_v62 }
  0x98   :  { %v1506_v46 = vld [vmem:[#allocation1 + $0x1] ss:$4 sm:$0xff]  ;;  %v1508_v48 = vld [vmem:[#allocation1 + $0x2] ss:$4 sm:$0xff]  ;;  %v1510_v50 = vld [vmem:[#allocation1 + $0x3] ss:$4 sm:$0xff]  ;;  %1153 = vmatmul.msk.f32.gmra.mxu1 %vm215_vm7, %v1451_v11 }
  0x99   :  { %499 = vst.sshfl [vmem:[#allocation1] sm:$0xff pattern:$0x73625140] %v1253_v5  ;;  %v550_v31 = vrot.slane %v1510_v50, 7  ;;  %v547_v49 = vrot.slane %v1508_v48, 7 }
  0x9b   :  { %v552_v40 = vrot.slane %v550_v31, 2  ;;  %v549_v48 = vrot.slane %v547_v49, 2  ;;  %1161 = vmatmul.msk.f32.gmra.mxu2 %vm215_vm7, %v1488_v39 }
  0x9c   :  { %v1518_v52 = vld [vmem:[#allocation1 + $0x20] ss:$4 sm:$0xff] }
  0x9d   :  { %500 = vst.sshfl [vmem:[#allocation1 + $0x20] sm:$0xff pattern:$0x73625140] %v1516_v51  ;;  %v553_v50 = vrot.slane %v1518_v52, 7  ;;  %v1163_v52 = vrot.slane %v1506_v46, 9  ;;  %v544_v46 = vsel %vm1279_vm6, %v542_v29, %v543_v30 }
  0x9f   :  { %v554_v53 = vsel %vm1279_vm6, %v552_v40, %v553_v50  ;;  %v548_v8 = vsel %vm1279_vm6, %v1163_v52, %v547_v49 }
  0xa0   :  { %v1521_v54 = vld [vmem:[#allocation1 + $0x1] ss:$4 sm:$0xff]  ;;  %v1523_v55 = vld [vmem:[#allocation1 + $0x2] ss:$4 sm:$0xff]  ;;  %v1525_v57 = vld [vmem:[#allocation1 + $0x3] ss:$4 sm:$0xff]  ;;  %1154 = vmatmul.msk.f32.gmra.mxu1 %vm215_vm7, %v1460_v17 }
  0xa1   :  { %505 = vst.sshfl [vmem:[#allocation1] sm:$0xff pattern:$0x73625140] %v1264_v10  ;;  %v557_v7 = vrot.slane %v1523_v55, 7  ;;  %v1164_v55 = vrot.slane %v1521_v54, 9  ;;  %v560_v3 = vrot.slane %v1525_v57, 7 }
  0xa3   :  { %v559_v36 = vrot.slane %v557_v7, 2  ;;  %v558_v28 = vsel %vm1279_vm6, %v1164_v55, %v557_v7  ;;  %v562_v40 = vrot.slane %v560_v3, 2 }
  0xa4   :  { %v1533_v60 = vld [vmem:[#allocation1 + $0x20] ss:$4 sm:$0xff] }
  0xa5   :  { %506 = vst.sshfl [vmem:[#allocation1 + $0x20] sm:$0xff pattern:$0x73625140] %v1531_v59  ;;  %v561_v32 = vsel %vm1279_vm6, %v559_v36, %v560_v3  ;;  %v563_v50 = vrot.slane %v1533_v60, 7 }
  0xa7   :  { %v564_v60 = vsel %vm1279_vm6, %v562_v40, %v563_v50 }
  0xa8   :  { %v1560_v58 = vld [vmem:[#allocation1 + $0x1] ss:$4 sm:$0xff]  ;;  %v1562_v61 = vld [vmem:[#allocation1 + $0x2] ss:$4 sm:$0xff]  ;;  %v1564_v1 = vld [vmem:[#allocation1 + $0x3] ss:$4 sm:$0xff]  ;;  %1155 = vmatmul.msk.f32.gmra.mxu1 %vm215_vm7, %v1463_v20 }
  0xa9   :  { %511 = vst.sshfl [vmem:[#allocation1] sm:$0xff pattern:$0x73625140] %v1329_v47  ;;  %v567_v57 = vrot.slane %v1562_v61, 7  ;;  %v570_v62 = vrot.slane %v1564_v1, 7  ;;  %v1165_v7 = vrot.slane %v1560_v58, 9 }
  0xab   :  { %v569_v61 = vrot.slane %v567_v57, 2  ;;  %v572_v1 = vrot.slane %v570_v62, 2  ;;  %v568_v58 = vsel %vm1279_vm6, %v1165_v7, %v567_v57 }
  0xac   :  { %v1580_v13 = vld [vmem:[#allocation1 + $0x20] ss:$4 sm:$0xff] }
  0xad   :  { %512 = vst.sshfl [vmem:[#allocation1 + $0x20] sm:$0xff pattern:$0x73625140] %v1576_v12  ;;  %v573_v29 = vrot.slane %v1580_v13, 7  ;;  %v571_v49 = vsel %vm1279_vm6, %v569_v61, %v570_v62 }
  0xaf   :  { %v574_v13 = vsel %vm1279_vm6, %v572_v1, %v573_v29 }
  0xb0   :  { %v1583_v15 = vld [vmem:[#allocation1 + $0x1] ss:$4 sm:$0xff]  ;;  %v1585_v16 = vld [vmem:[#allocation1 + $0x2] ss:$4 sm:$0xff]  ;;  %v1587_v19 = vld [vmem:[#allocation1 + $0x3] ss:$4 sm:$0xff] }
  0xb1   :  { %517 = vst.sshfl [vmem:[#allocation1] sm:$0xff pattern:$0x73625140] %v1306_v34  ;;  %v580_v37 = vrot.slane %v1587_v19, 7  ;;  %v1166_v52 = vrot.slane %v1583_v15, 9 }
  0xb3   :  { %v582_v19 = vrot.slane %v580_v37, 2 }
  0xb4   :  { %v1600_v23 = vld [vmem:[#allocation1 + $0x20] ss:$4 sm:$0xff] }
  0xb5   :  { %518 = vst.sshfl [vmem:[#allocation1 + $0x20] sm:$0xff pattern:$0x73625140] %v1593_v21 }
  0xb8   :  { %v1605_v24 = vld [vmem:[#allocation1 + $0x1] ss:$4 sm:$0xff]  ;;  %v1607_v25 = vld [vmem:[#allocation1 + $0x2] ss:$4 sm:$0xff]  ;;  %v1609_v26 = vld [vmem:[#allocation1 + $0x3] ss:$4 sm:$0xff] }
  0xb9   :  { %523 = vst.sshfl [vmem:[#allocation1] sm:$0xff pattern:$0x73625140] %v1322_v44  ;;  %v1167_v30 = vrot.slane %v1605_v24, 9  ;;  %v583_v24 = vrot.slane %v1600_v23, 7  ;;  %v590_v55 = vrot.slane %v1609_v26, 7 }
  0xbb   :  { %v584_v26 = vsel %vm1279_vm6, %v582_v19, %v583_v24 }
  0xbc   :  { %v1621_v6 = vld [vmem:[#allocation1 + $0x20] ss:$4 sm:$0xff] }
  0xbd   :  { %524 = vst.sshfl [vmem:[#allocation1 + $0x20] sm:$0xff pattern:$0x73625140] %v1615_v27 }
  0xc0   :  { %v1631_v63 = vld [vmem:[#allocation1 + $0x1] ss:$4 sm:$0xff]  ;;  %v1633_v35 = vld [vmem:[#allocation1 + $0x2] ss:$4 sm:$0xff]  ;;  %v1635_v0 = vld [vmem:[#allocation1 + $0x3] ss:$4 sm:$0xff] }
  0xc1   :  { %529 = vst.sshfl [vmem:[#allocation1] sm:$0xff pattern:$0x73625140] %v1364_v14  ;;  %v597_v39 = vrot.slane %v1633_v35, 7  ;;  %v1168_v17 = vrot.slane %v1631_v63, 9  ;;  %v600_v35 = vrot.slane %v1635_v0, 7 }
  0xc2   :  { %615 = vst [vmem:[#allocation1] ss:$4 sm:$0xff] %v538_v33  ;;  %v551_v33 = vsel %vm1279_vm6, %v549_v48, %v550_v31  ;;  %v577_v31 = vrot.slane %v1585_v16, 7  ;;  %v587_v16 = vrot.slane %v1607_v25, 7  ;;  %v593_v48 = vrot.slane %v1621_v6, 7 }
  0xc3   :  { %v598_v63 = vsel %vm1279_vm6, %v1168_v17, %v597_v39  ;;  %v602_v40 = vrot.slane %v600_v35, 2 }
  0xc4   :  { %v1651_v56 = vld [vmem:[#allocation1 + $0x20] ss:$4 sm:$0xff]  ;;  %v588_v15 = vsel %vm1279_vm6, %v1167_v30, %v587_v16  ;;  %v589_v36 = vrot.slane %v587_v16, 2 }
  0xc5   :  { %530 = vst.sshfl [vmem:[#allocation1 + $0x20] sm:$0xff pattern:$0x73625140] %v1643_v42 }
  0xc6   :  { %625 = vst [vmem:[#allocation1 + $0x21] ss:$4 sm:$0xff] %v554_v53  ;;  %v579_v53 = vrot.slane %v577_v31, 2 }
  0xc7   :  { %627 = vst [vmem:[#allocation1 + $0x22] ss:$4 sm:$0xff] %v558_v28  ;;  %v599_v28 = vrot.slane %v597_v39, 2 }
  0xc8   :  { %v1662_v9 = vld [vmem:[#allocation1 + $0x1] ss:$4 sm:$0xff]  ;;  %v1664_v22 = vld [vmem:[#allocation1 + $0x2] ss:$4 sm:$0xff]  ;;  %v1666_v54 = vld [vmem:[#allocation1 + $0x3] ss:$4 sm:$0xff]  ;;  %v581_v23 = vsel %vm1279_vm6, %v579_v53, %v580_v37 }
  0xc9   :  { %617 = vst [vmem:[#allocation1 + $0x1] ss:$4 sm:$0xff] %v541_v45  ;;  %v578_v45 = vsel %vm1279_vm6, %v1166_v52, %v577_v31  ;;  %v607_v3 = vrot.slane %v1664_v22, 7  ;;  %v1169_v57 = vrot.slane %v1662_v9, 9  ;;  %v601_v0 = vsel %vm1279_vm6, %v599_v28, %v600_v35 }
  0xca   :  { %619 = vst [vmem:[#allocation1 + $0x2] ss:$4 sm:$0xff] %v544_v46  ;;  %v592_v46 = vrot.slane %v590_v55, 2  ;;  %v603_v9 = vrot.slane %v1651_v56, 7 }
  0xcb   :  { %621 = vst [vmem:[#allocation1 + $0x3] ss:$4 sm:$0xff] %v548_v8  ;;  %v610_v8 = vrot.slane %v1666_v54, 7  ;;  %v609_v22 = vrot.slane %v607_v3, 2  ;;  %v608_v50 = vsel %vm1279_vm6, %v1169_v57, %v607_v3 }
  0xcc   :  { %v1681_v41 = vld [vmem:[#allocation1 + $0x20] ss:$4 sm:$0xff]  ;;  %629 = vst [vmem:[#allocation1 + $0x23] ss:$4 sm:$0xff] %v561_v32  ;;  %v591_v32 = vsel %vm1279_vm6, %v589_v36, %v590_v55  ;;  %v594_v6 = vsel %vm1279_vm6, %v592_v46, %v593_v48  ;;  %v604_v20 = vsel %vm1279_vm6, %v602_v40, %v603_v9  ;;  %v245_v46 = vpop.f32.mrf.mxu0 }
  0xcd   :  { %623 = vst [vmem:[#allocation1 + $0x20] ss:$4 sm:$0xff] %v551_v33  ;;  %v612_v54 = vrot.slane %v610_v8, 2  ;;  %v613_v62 = vrot.slane %v1681_v41, 7  ;;  %v611_v41 = vsel %vm1279_vm6, %v609_v22, %v610_v8  ;;  %v1067_v40 = vld [vmem:[%s1905_s3 + $0x78] sm:$0xff]  ;;  %v1066_v9 = vld [vmem:[%s1905_s3 + $0x70] sm:$0xff] }
  0xce   :  { %1092 = vmatpush.msrb.mxu1 %v1067_v40 }
  0xcf   :  { %v614_v7 = vsel %vm1279_vm6, %v612_v54, %v613_v62  ;;  %v1788_v54 = vld [vmem:[%s1903_s2] ss:$0 sm:$0xff] }
  0xd0   :  { %1093 = vmatpush.msrb.mxu1 %v1066_v9  ;;  %v1057_v9 = vld [vmem:[%s1905_s3 + $0x28] sm:$0xff] }
  0xd2   :  { %v630_v11 = vld.sshfl [vmem:[#allocation1] sm:$0xff pattern:$0x73625140] }
  0xd3   :  { %1170 = vmatmul.msk.f32.vlgmr.msrb.gmra.mxu3 %vm215_vm7, %v630_v11  ;;  %632 = vst [vmem:[#allocation1] ss:$4 sm:$0xff] %v564_v60  ;;  %v55_v11 = vld [vmem:[%s1901_s1 + $0x80] sm:$0xff] }
  0xd4   :  { %633 = vst [vmem:[#allocation1 + $0x1] ss:$4 sm:$0xff] %v568_v58  ;;  %v631_v25 = vld.sshfl [vmem:[#allocation1 + $0x20] sm:$0xff pattern:$0x73625140]  ;;  %v248_v17 = vpop.f32.mrf.mxu0 }
  0xd5   :  { %634 = vst [vmem:[#allocation1 + $0x2] ss:$4 sm:$0xff] %v571_v49 }
  0xd6   :  { %635 = vst [vmem:[#allocation1 + $0x3] ss:$4 sm:$0xff] %v574_v13 }
  0xd7   :  { %639 = vst [vmem:[#allocation1 + $0x23] ss:$4 sm:$0xff] %v588_v15 }
  0xd8   :  { %636 = vst [vmem:[#allocation1 + $0x20] ss:$4 sm:$0xff] %v578_v45  ;;  %v251_v45 = vpop.f32.mrf.mxu2 }
  0xd9   :  { %637 = vst [vmem:[#allocation1 + $0x21] ss:$4 sm:$0xff] %v581_v23  ;;  %v1781_v23 = vpop.f32.mrf.mxu3 }
  0xda   :  { %638 = vst [vmem:[#allocation1 + $0x22] ss:$4 sm:$0xff] %v584_v26 }
  0xdb   :  { %1171 = vmatmul.msk.f32.gmra.mxu3 %vm215_vm7, %v631_v25 }
  0xdd   :  { %v640_v33 = vld.sshfl [vmem:[#allocation1] sm:$0xff pattern:$0x73625140] }
  0xde   :  { %642 = vst [vmem:[#allocation1] ss:$4 sm:$0xff] %v591_v32 }
  0xdf   :  { %643 = vst [vmem:[#allocation1 + $0x1] ss:$4 sm:$0xff] %v594_v6 }
  0xe0   :  { %644 = vst [vmem:[#allocation1 + $0x2] ss:$4 sm:$0xff] %v598_v63  ;;  %v254_v39 = vpop.f32.mrf.mxu2 }
  0xe1   :  { %v641_v61 = vld.sshfl [vmem:[#allocation1 + $0x20] sm:$0xff pattern:$0x73625140]  ;;  %645 = vst [vmem:[#allocation1 + $0x3] ss:$4 sm:$0xff] %v601_v0  ;;  %v1783_v36 = vpop.f32.mrf.mxu3 }
  0xe2   :  { %647 = vst [vmem:[#allocation1 + $0x21] ss:$4 sm:$0xff] %v608_v50 }
  0xe3   :  { %1172 = vmatmul.msk.f32.gmra.mxu3 %vm215_vm7, %v640_v33  ;;  %648 = vst [vmem:[#allocation1 + $0x22] ss:$4 sm:$0xff] %v611_v41  ;;  %v1799_v41 = vld [vmem:[%s1906_s5] sm:$0x3f] }
  0xe4   :  { %649 = vst [vmem:[#allocation1 + $0x23] ss:$4 sm:$0xff] %v614_v7 }
  0xe5   :  { %646 = vst [vmem:[#allocation1 + $0x20] ss:$4 sm:$0xff] %v604_v20 }
  0xe8   :  { %v650_v56 = vld.sshfl [vmem:[#allocation1] sm:$0xff pattern:$0x73625140] }
  0xe9   :  { %705 = vst.sshfl [vmem:[#allocation1] sm:$0xff pattern:$0x73625140] %v1240_v2 }
  0xeb   :  { %1173 = vmatmul.msk.f32.gmra.mxu3 %vm215_vm7, %v641_v61  ;;  %v1065_v61 = vld [vmem:[%s1905_s3 + $0x68] sm:$0xff] }
  0xec   :  { %v651_v31 = vld.sshfl [vmem:[#allocation1 + $0x20] sm:$0xff pattern:$0x73625140]  ;;  %1094 = vmatpush.msrb.mxu1 %v1065_v61 }
  0xed   :  { %706 = vst.sshfl [vmem:[#allocation1 + $0x20] sm:$0xff pattern:$0x73625140] %v1486_v38 }
  0xf0   :  { %v708_v1 = vld [vmem:[#allocation1 + $0x2] ss:$4 sm:$0xff]  ;;  %v710_v29 = vld [vmem:[#allocation1 + $0x3] ss:$4 sm:$0xff] }
  0xf1   :  { %713 = vst.sshfl [vmem:[#allocation1] sm:$0xff pattern:$0x73625140] %v1248_v4 }
  0xf3   :  { %1174 = vmatmul.msk.f32.gmra.mxu3 %vm215_vm7, %v650_v56 }
  0xf4   :  { %v712_v18 = vld [vmem:[#allocation1 + $0x20] ss:$4 sm:$0xff] }
  0xf5   :  { %714 = vst.sshfl [vmem:[#allocation1 + $0x20] sm:$0xff pattern:$0x73625140] %v1501_v43 }
  0xf6   :  { %v451_v48 = vpop.f32.mrf.mxu2 }
  0xf8   :  { %v715_v37 = vld [vmem:[#allocation1 + $0x2] ss:$4 sm:$0xff]  ;;  %v716_v60 = vld [vmem:[#allocation1 + $0x3] ss:$4 sm:$0xff] }
  0xf9   :  { %718 = vst.sshfl [vmem:[#allocation1] sm:$0xff pattern:$0x73625140] %v1253_v5  ;;  %v58_v5 = vld [vmem:[%s1901_s1 + $0x98] sm:$0xff] }
  0xfa   :  { %809 = vmatpush.msrb.mxu0 %v58_v5 }
  0xfb   :  { %1175 = vmatmul.msk.f32.gmra.mxu3 %vm215_vm7, %v651_v31  ;;  %v1806_v31 = vrot.slane %v1799_v41, 2 }
  0xfc   :  { %v717_v2 = vld [vmem:[#allocation1 + $0x20] ss:$4 sm:$0xff] }
  0xfd   :  { %719 = vst.sshfl [vmem:[#allocation1 + $0x20] sm:$0xff pattern:$0x73625140] %v1516_v51  ;;  %v57_v51 = vld [vmem:[%s1901_s1 + $0x90] sm:$0xff]  ;;  %v329_v26 = vpop.f32.mrf.mxu1 }
  0xfe   :  { %810 = vmatpush.msrb.mxu0 %v57_v51  ;;  %v454_v28 = vpop.f32.mrf.mxu2  ;;  %v330_v35 = vadd.f32 %v329_v26, %v245_v46  ;;  %v1064_v51 = vld [vmem:[%s1905_s3 + $0x60] sm:$0xff] }
  0xff   :  { %1095 = vmatpush.msrb.mxu1 %v1064_v51  ;;  %v1060_v46 = vld [vmem:[%s1905_s3 + $0x40] sm:$0xff] }
 0x100   :  { %v720_v30 = vld [vmem:[#allocation1 + $0x2] ss:$4 sm:$0xff]  ;;  %v721_v38 = vld [vmem:[#allocation1 + $0x3] ss:$4 sm:$0xff]  ;;  %v469_v57 = vadd.f32 %v451_v48, %v330_v35 }
 0x101   :  { %723 = vst.sshfl [vmem:[#allocation1] sm:$0xff pattern:$0x73625140] %v1264_v10  ;;  %v56_v10 = vld [vmem:[%s1901_s1 + $0x88] sm:$0xff] }
 0x102   :  { %811 = vmatpush.msrb.mxu0 %v56_v10  ;;  %v1063_v10 = vld [vmem:[%s1905_s3 + $0x58] sm:$0xff] }
 0x103   :  { %1096 = vmatpush.msrb.mxu1 %v1063_v10 }
 0x104   :  { %v722_v58 = vld [vmem:[#allocation1 + $0x20] ss:$4 sm:$0xff]  ;;  %812 = vmatpush.msrb.mxu0 %v55_v11 }
 0x105   :  { %724 = vst.sshfl [vmem:[#allocation1 + $0x20] sm:$0xff pattern:$0x73625140] %v1531_v59  ;;  %v332_v8 = vpop.f32.mrf.mxu1 }
 0x106   :  { %v333_v22 = vadd.f32 %v332_v8, %v248_v17  ;;  %v457_v63 = vpop.f32.mrf.mxu2  ;;  %v1059_v8 = vld [vmem:[%s1905_s3 + $0x38] sm:$0xff] }
 0x108   :  { %v725_v4 = vld [vmem:[#allocation1 + $0x2] ss:$4 sm:$0xff]  ;;  %v726_v52 = vld [vmem:[#allocation1 + $0x3] ss:$4 sm:$0xff]  ;;  %v470_v50 = vadd.f32 %v454_v28, %v333_v22 }
 0x109   :  { %728 = vst.sshfl [vmem:[#allocation1] sm:$0xff pattern:$0x73625140] %v1329_v47  ;;  %v1058_v22 = vld [vmem:[%s1905_s3 + $0x30] sm:$0xff] }
 0x10c   :  { %v727_v43 = vld [vmem:[#allocation1 + $0x20] ss:$4 sm:$0xff] }
 0x10d   :  { %729 = vst.sshfl [vmem:[#allocation1 + $0x20] sm:$0xff pattern:$0x73625140] %v1576_v12  ;;  %v335_v6 = vpop.f32.mrf.mxu1 }
 0x110   :  { %v730_v59 = vld [vmem:[#allocation1 + $0x2] ss:$4 sm:$0xff]  ;;  %v731_v47 = vld [vmem:[#allocation1 + $0x3] ss:$4 sm:$0xff] }
 0x111   :  { %733 = vst.sshfl [vmem:[#allocation1] sm:$0xff pattern:$0x73625140] %v1306_v34 }
 0x114   :  { %v732_v49 = vld [vmem:[#allocation1 + $0x20] ss:$4 sm:$0xff] }
 0x115   :  { %734 = vst.sshfl [vmem:[#allocation1 + $0x20] sm:$0xff pattern:$0x73625140] %v1593_v21 }
 0x118   :  { %v735_v16 = vld [vmem:[#allocation1 + $0x2] ss:$4 sm:$0xff]  ;;  %v736_v12 = vld [vmem:[#allocation1 + $0x3] ss:$4 sm:$0xff] }
 0x119   :  { %738 = vst.sshfl [vmem:[#allocation1] sm:$0xff pattern:$0x73625140] %v1322_v44 }
 0x11c   :  { %v737_v53 = vld [vmem:[#allocation1 + $0x20] ss:$4 sm:$0xff] }
 0x11d   :  { %739 = vst.sshfl [vmem:[#allocation1 + $0x20] sm:$0xff pattern:$0x73625140] %v1615_v27 }
 0x120   :  { %v740_v13 = vld [vmem:[#allocation1 + $0x2] ss:$4 sm:$0xff]  ;;  %v741_v19 = vld [vmem:[#allocation1 + $0x3] ss:$4 sm:$0xff] }
 0x121   :  { %743 = vst.sshfl [vmem:[#allocation1] sm:$0xff pattern:$0x73625140] %v1364_v14 }
 0x122   :  { %748 = vst [vmem:[#allocation1] ss:$4 sm:$0xff] %v708_v1  ;;  %v1809_v1 = vrot.slane %v1799_v41, 4 }
 0x123   :  { %750 = vst [vmem:[#allocation1 + $0x1] ss:$4 sm:$0xff] %v710_v29  ;;  %v336_v29 = vadd.f32 %v335_v6, %v251_v45 }
 0x124   :  { %v742_v24 = vld [vmem:[#allocation1 + $0x20] ss:$4 sm:$0xff] }
 0x125   :  { %744 = vst.sshfl [vmem:[#allocation1 + $0x20] sm:$0xff pattern:$0x73625140] %v1643_v42 }
 0x126   :  { %758 = vst [vmem:[#allocation1 + $0x21] ss:$4 sm:$0xff] %v717_v2 }
 0x127   :  { %760 = vst [vmem:[#allocation1 + $0x22] ss:$4 sm:$0xff] %v720_v30 }
 0x128   :  { %v745_v34 = vld [vmem:[#allocation1 + $0x2] ss:$4 sm:$0xff]  ;;  %v746_v21 = vld [vmem:[#allocation1 + $0x3] ss:$4 sm:$0xff]  ;;  %762 = vst [vmem:[#allocation1 + $0x23] ss:$4 sm:$0xff] %v721_v38 }
 0x129   :  { %754 = vst [vmem:[#allocation1 + $0x3] ss:$4 sm:$0xff] %v715_v37  ;;  %v338_v37 = vpop.f32.mrf.mxu1 }
 0x12a   :  { %752 = vst [vmem:[#allocation1 + $0x2] ss:$4 sm:$0xff] %v712_v18 }
 0x12c   :  { %v747_v44 = vld [vmem:[#allocation1 + $0x20] ss:$4 sm:$0xff] }
 0x12d   :  { %756 = vst [vmem:[#allocation1 + $0x20] ss:$4 sm:$0xff] %v716_v60 }
 0x131   :  { %v763_v15 = vld.sshfl [vmem:[#allocation1] sm:$0xff pattern:$0x73625140] }
 0x132   :  { %1176 = vmatmul.msk.f32.vlgmr.msrb.gmra.mxu0 %vm215_vm7, %v763_v15  ;;  %765 = vst [vmem:[#allocation1] ss:$4 sm:$0xff] %v722_v58 }
 0x133   :  { %766 = vst [vmem:[#allocation1 + $0x1] ss:$4 sm:$0xff] %v725_v4 }
 0x134   :  { %v764_v14 = vld.sshfl [vmem:[#allocation1 + $0x20] sm:$0xff pattern:$0x73625140]  ;;  %767 = vst [vmem:[#allocation1 + $0x2] ss:$4 sm:$0xff] %v726_v52 }
 0x135   :  { %771 = vst [vmem:[#allocation1 + $0x22] ss:$4 sm:$0xff] %v732_v49 }
 0x136   :  { %769 = vst [vmem:[#allocation1 + $0x20] ss:$4 sm:$0xff] %v730_v59  ;;  %v471_v59 = vadd.f32 %v457_v63, %v336_v29 }
 0x137   :  { %770 = vst [vmem:[#allocation1 + $0x21] ss:$4 sm:$0xff] %v731_v47  ;;  %v460_v47 = vpop.f32.mrf.mxu2 }
 0x138   :  { %772 = vst [vmem:[#allocation1 + $0x23] ss:$4 sm:$0xff] %v735_v16 }
 0x139   :  { %768 = vst [vmem:[#allocation1 + $0x3] ss:$4 sm:$0xff] %v727_v43 }
 0x13a   :  { %1177 = vmatmul.msk.f32.gmra.mxu0 %vm215_vm7, %v764_v14 }
 0x13f   :  { %v774_v27 = vld.sshfl [vmem:[#allocation1 + $0x20] sm:$0xff pattern:$0x73625140]  ;;  %v463_v48 = vpop.f32.mrf.mxu2 }
 0x140   :  { %v773_v42 = vld.sshfl [vmem:[#allocation1] sm:$0xff pattern:$0x73625140]  ;;  %779 = vst [vmem:[#allocation1 + $0x20] ss:$4 sm:$0xff] %v742_v24 }
 0x141   :  { %775 = vst [vmem:[#allocation1] ss:$4 sm:$0xff] %v736_v12  ;;  %v339_v12 = vadd.f32 %v338_v37, %v254_v39 }
 0x142   :  { %1178 = vmatmul.msk.f32.gmra.mxu0 %vm215_vm7, %v773_v42  ;;  %776 = vst [vmem:[#allocation1 + $0x1] ss:$4 sm:$0xff] %v737_v53 }
 0x143   :  { %777 = vst [vmem:[#allocation1 + $0x2] ss:$4 sm:$0xff] %v740_v13  ;;  %v472_v45 = vadd.f32 %v460_v47, %v339_v12  ;;  %v1053_v47 = vld [vmem:[%s1905_s3 + $0x8] sm:$0xff]  ;;  %v1052_v12 = vld [vmem:[%s1905_s3] sm:$0xff] }
 0x144   :  { %778 = vst [vmem:[#allocation1 + $0x3] ss:$4 sm:$0xff] %v741_v19 }
 0x145   :  { %780 = vst [vmem:[#allocation1 + $0x21] ss:$4 sm:$0xff] %v745_v34 }
 0x146   :  { %781 = vst [vmem:[#allocation1 + $0x22] ss:$4 sm:$0xff] %v746_v21 }
 0x147   :  { %782 = vst [vmem:[#allocation1 + $0x23] ss:$4 sm:$0xff] %v747_v44  ;;  %v341_v44 = vpop.f32.mrf.mxu1 }
 0x148   :  { %v342_v28 = vadd.f32 %v341_v44, %v1781_v23 }
 0x14a   :  { %1179 = vmatmul.msk.f32.gmra.mxu0 %vm215_vm7, %v774_v27 }
 0x14b   :  { %v783_v55 = vld.sshfl [vmem:[#allocation1] sm:$0xff pattern:$0x73625140] }
 0x14e   :  { %v784_v25 = vld.sshfl [vmem:[#allocation1 + $0x20] sm:$0xff pattern:$0x73625140] }
 0x14f   :  { %v344_v61 = vpop.f32.mrf.mxu1 }
 0x152   :  { %1180 = vmatmul.msk.f32.gmra.mxu0 %vm215_vm7, %v783_v55  ;;  %v1062_v55 = vld [vmem:[%s1905_s3 + $0x50] sm:$0xff] }
 0x153   :  { %1097 = vmatpush.msrb.mxu1 %v1062_v55 }
 0x156   :  { %v681_v3 = vpop.f32.mrf.mxu3 }
 0x157   :  { %v699_v33 = vadd.f32 %v681_v3, %v469_v57 }
 0x15a   :  { %1181 = vmatmul.msk.f32.gmra.mxu0 %vm215_vm7, %v784_v25  ;;  %v1061_v25 = vld [vmem:[%s1905_s3 + $0x48] sm:$0xff] }
 0x15b   :  { %1098 = vmatpush.msrb.mxu1 %v1061_v25 }
 0x15d   :  { %1099 = vmatpush.msrb.mxu1 %v1060_v46 }
 0x15e   :  { %v684_v32 = vpop.f32.mrf.mxu3 }
 0x15f   :  { %v700_v18 = vadd.f32 %v684_v32, %v470_v50  ;;  %1100 = vmatpush.msrb.mxu1 %v1059_v8  ;;  %v473_v50 = vadd.f32 %v463_v48, %v342_v28 }
 0x161   :  { %1101 = vmatpush.msrb.mxu1 %v1058_v22 }
 0x163   :  { %1102 = vmatpush.msrb.mxu1 %v1057_v9 }
 0x166   :  { %v687_v20 = vpop.f32.mrf.mxu3 }
 0x167   :  { %v701_v16 = vadd.f32 %v687_v20, %v471_v59 }
 0x16e   :  { %v690_v53 = vpop.f32.mrf.mxu3 }
 0x16f   :  { %v702_v17 = vadd.f32 %v690_v53, %v472_v45 }
 0x1af   :  { %v814_v62 = vpop.f32.mrf.mxu0 }
 0x1b0   :  { %v832_v0 = vadd.f32 %v814_v62, %v699_v33  ;;  %v693_v62 = vpop.f32.mrf.mxu3 }
 0x1b1   :  { %v703_v37 = vadd.f32 %v693_v62, %v473_v50 }
 0x1b2   :  { %v842_v7 = vadd.f32 %v1788_v54, %v832_v0 }
 0x1b4   :  { %v848_v56 = vmax.f32 %v842_v7, 0.0 }
 0x1b6   :  { %v860_v60 = vrot.slane %v848_v56, 2  ;;  %v861_v2 = vrot.slane %v848_v56, 4  ;;  %v862_v30 = vrot.slane %v848_v56, 6  ;;  %v902_v38 = vmul.f32 %v1799_v41, %v848_v56  ;;  %v1056_v56 = vld [vmem:[%s1905_s3 + $0x20] sm:$0xff] }
 0x1b7   :  { %v817_v58 = vpop.f32.mrf.mxu0  ;;  %1103 = vmatpush.msrb.mxu1 %v1056_v56 }
 0x1b8   :  { %v903_v4 = vmul.f32 %v1806_v31, %v860_v60  ;;  %v904_v52 = vmul.f32 %v1809_v1, %v861_v2  ;;  %v905_v5 = vmul.f32 %v1799_v41, %v862_v30  ;;  %950 = vst [vmem:[#allocation1] ss:$4 sm:$0xff] %v902_v38  ;;  %v833_v43 = vadd.f32 %v817_v58, %v700_v18  ;;  %v1055_v18 = vld [vmem:[%s1905_s3 + $0x18] sm:$0xff]  ;;  %v466_v2 = vpop.f32.mrf.mxu2 }
 0x1b9   :  { %v345_v60 = vadd.f32 %v344_v61, %v1783_v36  ;;  %1104 = vmatpush.msrb.mxu1 %v1055_v18 }
 0x1ba   :  { %952 = vst [vmem:[#allocation1 + $0x1] ss:$4 sm:$0xff] %v903_v4  ;;  %v843_v11 = vadd.f32 %v1788_v54, %v833_v43 }
 0x1bb   :  { %954 = vst [vmem:[#allocation1 + $0x2] ss:$4 sm:$0xff] %v904_v52  ;;  %v1054_v52 = vld [vmem:[%s1905_s3 + $0x10] sm:$0xff] }
 0x1bc   :  { %957 = vst [vmem:[#allocation1 + $0x20] ss:$4 sm:$0xff] %v905_v5  ;;  %v849_v49 = vmax.f32 %v843_v11, 0.0  ;;  %v474_v11 = vadd.f32 %v466_v2, %v345_v60  ;;  %1105 = vmatpush.msrb.mxu1 %v1054_v52 }
 0x1be   :  { %v863_v13 = vrot.slane %v849_v49, 2  ;;  %v864_v19 = vrot.slane %v849_v49, 4  ;;  %v865_v24 = vrot.slane %v849_v49, 6  ;;  %v906_v34 = vmul.f32 %v1806_v31, %v849_v49  ;;  %v696_v49 = vpop.f32.mrf.mxu3  ;;  %1106 = vmatpush.msrb.mxu1 %v1053_v47 }
 0x1bf   :  { %v820_v21 = vpop.f32.mrf.mxu0 }
 0x1c0   :  { %v907_v15 = vmul.f32 %v1809_v1, %v863_v13  ;;  %v908_v14 = vmul.f32 %v1799_v41, %v864_v19  ;;  %v909_v27 = vmul.f32 %v1806_v31, %v865_v24  ;;  %959 = vst [vmem:[#allocation1 + $0x21] ss:$4 sm:$0xff] %v906_v34  ;;  %v834_v42 = vadd.f32 %v820_v21, %v701_v16 }
 0x1c1   :  { %v704_v34 = vadd.f32 %v696_v49, %v474_v11  ;;  %1107 = vmatpush.msrb.mxu1 %v1052_v12 }
 0x1c2   :  { %v1832_v39 = vld.sshfl [vmem:[#allocation1] sm:$0xff pattern:$0x73625140]  ;;  %961 = vst [vmem:[#allocation1 + $0x22] ss:$4 sm:$0xff] %v907_v15  ;;  %v844_v26 = vadd.f32 %v1788_v54, %v834_v42 }
 0x1c3   :  { %963 = vst [vmem:[#allocation1] ss:$4 sm:$0xff] %v908_v14  ;;  %v996_v21 = vsel %vm995_vm8, %v1832_v39, -inf }
 0x1c4   :  { %964 = vst [vmem:[#allocation1 + $0x1] ss:$4 sm:$0xff] %v909_v27  ;;  %v850_v3 = vmax.f32 %v844_v26, 0.0  ;;  %v997_v8 = vrot.slane %v996_v21, 4 }
 0x1c6   :  { %v866_v35 = vrot.slane %v850_v3, 2  ;;  %v867_v32 = vrot.slane %v850_v3, 4  ;;  %v868_v57 = vrot.slane %v850_v3, 6  ;;  %v910_v6 = vmul.f32 %v1809_v1, %v850_v3 }
 0x1c7   :  { %v823_v33 = vpop.f32.mrf.mxu0 }
 0x1c8   :  { %v911_v63 = vmul.f32 %v1799_v41, %v866_v35  ;;  %v912_v0 = vmul.f32 %v1806_v31, %v867_v32  ;;  %v913_v40 = vmul.f32 %v1809_v1, %v868_v57  ;;  %965 = vst [vmem:[#allocation1 + $0x2] ss:$4 sm:$0xff] %v910_v6  ;;  %v835_v23 = vadd.f32 %v823_v33, %v702_v17 }
 0x1c9   :  { %v962_v7 = vld.sshfl [vmem:[#allocation1 + $0x20] sm:$0xff pattern:$0x73625140]  ;;  %v998_v33 = vmax.f32 %v996_v21, %v997_v8 }
 0x1ca   :  { %v845_v20 = vadd.f32 %v1788_v54, %v835_v23  ;;  %967 = vst [vmem:[#allocation1 + $0x20] ss:$4 sm:$0xff] %v911_v63  ;;  %v1003_v19 = vsel %vm995_vm8, %v962_v7, -inf }
 0x1cb   :  { %968 = vst [vmem:[#allocation1 + $0x21] ss:$4 sm:$0xff] %v912_v0  ;;  %v1004_v55 = vrot.slane %v1003_v19, 4 }
 0x1cc   :  { %v851_v29 = vmax.f32 %v845_v20, 0.0  ;;  %969 = vst [vmem:[#allocation1 + $0x22] ss:$4 sm:$0xff] %v913_v40 }
 0x1cd   :  { %v1005_v28 = vmax.f32 %v1003_v19, %v1004_v55 }
 0x1ce   :  { %v869_v30 = vrot.slane %v851_v29, 2  ;;  %v870_v38 = vrot.slane %v851_v29, 4  ;;  %v871_v58 = vrot.slane %v851_v29, 6  ;;  %v914_v4 = vmul.f32 %v1799_v41, %v851_v29 }
 0x1cf   :  { %v826_v5 = vpop.f32.mrf.mxu0  ;;  %v966_v43 = vld.sshfl [vmem:[#allocation1] sm:$0xff pattern:$0x73625140]  ;;  %v1006_v23 = vrot.slane %v1005_v28, 2  ;;  %v999_v29 = vrot.slane %v998_v33, 2 }
 0x1d0   :  { %v915_v51 = vmul.f32 %v1806_v31, %v869_v30  ;;  %v916_v10 = vmul.f32 %v1809_v1, %v870_v38  ;;  %v917_v36 = vmul.f32 %v1799_v41, %v871_v58  ;;  %v836_v59 = vadd.f32 %v826_v5, %v703_v37  ;;  %971 = vst [vmem:[#allocation1] ss:$4 sm:$0xff] %v914_v4 }
 0x1d1   :  { %v1010_v24 = vsel %vm995_vm8, %v966_v43, -inf  ;;  %v1007_v37 = vmax.f32 %v1005_v28, %v1006_v23  ;;  %v1000_v58 = vmax.f32 %v998_v33, %v999_v29 }
 0x1d2   :  { %v846_v16 = vadd.f32 %v1788_v54, %v836_v59  ;;  %972 = vst [vmem:[#allocation1 + $0x1] ss:$4 sm:$0xff] %v915_v51  ;;  %v1011_v25 = vrot.slane %v1010_v24, 4 }
 0x1d3   :  { %v970_v53 = vld.sshfl [vmem:[#allocation1 + $0x20] sm:$0xff pattern:$0x73625140]  ;;  %973 = vst [vmem:[#allocation1 + $0x2] ss:$4 sm:$0xff] %v916_v10  ;;  %v1001_v10 = vrot.slane %v1000_v58, 1 }
 0x1d4   :  { %v852_v13 = vmax.f32 %v846_v16, 0.0  ;;  %975 = vst [vmem:[#allocation1 + $0x20] ss:$4 sm:$0xff] %v917_v36  ;;  %v1017_v45 = vsel %vm995_vm8, %v970_v53, -inf  ;;  %v1012_v35 = vmax.f32 %v1010_v24, %v1011_v25 }
 0x1d5   :  { %v1018_v32 = vrot.slane %v1017_v45, 4  ;;  %v1002_v19 = vmax.f32 %v1000_v58, %v1001_v10 }
 0x1d6   :  { %v872_v44 = vrot.slane %v852_v13, 2  ;;  %v873_v15 = vrot.slane %v852_v13, 4  ;;  %v874_v14 = vrot.slane %v852_v13, 6  ;;  %v918_v27 = vmul.f32 %v1806_v31, %v852_v13 }
 0x1d7   :  { %v829_v42 = vpop.f32.mrf.mxu0  ;;  %v1013_v9 = vrot.slane %v1012_v35, 2 }
 0x1d8   :  { %v919_v26 = vmul.f32 %v1809_v1, %v872_v44  ;;  %v920_v46 = vmul.f32 %v1799_v41, %v873_v15  ;;  %v921_v48 = vmul.f32 %v1806_v31, %v874_v14  ;;  %v837_v3 = vadd.f32 %v829_v42, %v704_v34  ;;  %976 = vst [vmem:[#allocation1 + $0x21] ss:$4 sm:$0xff] %v918_v27 }
 0x1d9   :  { %v1014_v30 = vmax.f32 %v1012_v35, %v1013_v9 }
 0x1da   :  { %v847_v39 = vadd.f32 %v1788_v54, %v837_v3  ;;  %v974_v17 = vld.sshfl [vmem:[#allocation1] sm:$0xff pattern:$0x73625140]  ;;  %977 = vst [vmem:[#allocation1 + $0x22] ss:$4 sm:$0xff] %v919_v26  ;;  %v1019_v54 = vmax.f32 %v1017_v45, %v1018_v32 }
 0x1db   :  { %979 = vst [vmem:[#allocation1] ss:$4 sm:$0xff] %v920_v46  ;;  %v1024_v57 = vsel %vm995_vm8, %v974_v17, -inf  ;;  %v1015_v5 = vrot.slane %v1014_v30, 1 }
 0x1dc   :  { %v853_v6 = vmax.f32 %v847_v39, 0.0  ;;  %980 = vst [vmem:[#allocation1 + $0x1] ss:$4 sm:$0xff] %v921_v48  ;;  %v1025_v22 = vrot.slane %v1024_v57, 4  ;;  %v1020_v60 = vrot.slane %v1019_v54, 2 }
 0x1dd   :  { %v1016_v12 = vmax.f32 %v1014_v30, %v1015_v5 }
 0x1de   :  { %v875_v62 = vrot.slane %v853_v6, 2  ;;  %v876_v63 = vrot.slane %v853_v6, 4  ;;  %v877_v0 = vrot.slane %v853_v6, 6  ;;  %v922_v40 = vmul.f32 %v1809_v1, %v853_v6 }
 0x1df   :  { %v1026_v20 = vmax.f32 %v1024_v57, %v1025_v22  ;;  %v1021_v52 = vmax.f32 %v1019_v54, %v1020_v60  ;;  %v1191_v57 = vld [vmem:[%s1904_s4] ss:$0 sm:$0xff] }
 0x1e0   :  { %v923_v50 = vmul.f32 %v1799_v41, %v875_v62  ;;  %v924_v7 = vmul.f32 %v1806_v31, %v876_v63  ;;  %v925_v61 = vmul.f32 %v1809_v1, %v877_v0  ;;  %981 = vst [vmem:[#allocation1 + $0x2] ss:$4 sm:$0xff] %v922_v40  ;;  %v1008_v31 = vrot.slane %v1007_v37, 1 }
 0x1e1   :  { %v978_v56 = vld.sshfl [vmem:[#allocation1 + $0x20] sm:$0xff pattern:$0x73625140]  ;;  %v1027_v38 = vrot.slane %v1026_v20, 2  ;;  %v1022_v49 = vrot.slane %v1021_v52, 1 }
 0x1e2   :  { %983 = vst [vmem:[#allocation1 + $0x20] ss:$4 sm:$0xff] %v923_v50  ;;  %v1031_v18 = vsel %vm995_vm8, %v978_v56, -inf  ;;  %v1009_v11 = vmax.f32 %v1007_v37, %v1008_v31 }
 0x1e3   :  { %984 = vst [vmem:[#allocation1 + $0x21] ss:$4 sm:$0xff] %v924_v7  ;;  %v1032_v2 = vrot.slane %v1031_v18, 4  ;;  %v1028_v43 = vmax.f32 %v1026_v20, %v1027_v38  ;;  %v1023_v44 = vmax.f32 %v1021_v52, %v1022_v49 }
 0x1e4   :  { %985 = vst [vmem:[#allocation1 + $0x22] ss:$4 sm:$0xff] %v925_v61  ;;  %v1081_v27 = vsel %vm1080_vm9, %v1009_v11, %v1002_v19 }
 0x1e5   :  { %v1033_v41 = vmax.f32 %v1031_v18, %v1032_v2  ;;  %v1029_v53 = vrot.slane %v1028_v43, 1  ;;  %v1082_v55 = vsel %vm92_vm1, %v1016_v12, %v1081_v27 }
 0x1e6   :  { %v1084_v3 = vsel %vm1083_vm10, %v1023_v44, %v1082_v55 }
 0x1e7   :  { %v982_v4 = vld.sshfl [vmem:[#allocation1] sm:$0xff pattern:$0x73625140]  ;;  %v1034_v1 = vrot.slane %v1033_v41, 2  ;;  %v1030_v42 = vmax.f32 %v1028_v43, %v1029_v53 }
 0x1e8   :  { %v1038_v51 = vsel %vm995_vm8, %v982_v4, -inf }
 0x1e9   :  { %v1035_v36 = vmax.f32 %v1033_v41, %v1034_v1  ;;  %v1039_v59 = vrot.slane %v1038_v51, 4  ;;  %v1085_v8 = vsel %vm94_vm2, %v1030_v42, %v1084_v3 }
 0x1eb   :  { %v986_v47 = vld.sshfl [vmem:[#allocation1 + $0x20] sm:$0xff pattern:$0x73625140]  ;;  %v1040_v16 = vmax.f32 %v1038_v51, %v1039_v59  ;;  %v1036_v24 = vrot.slane %v1035_v36, 1 }
 0x1ec   :  { %v1045_v13 = vsel %vm995_vm8, %v986_v47, -inf }
 0x1ed   :  { %v1041_v34 = vrot.slane %v1040_v16, 2  ;;  %v1046_v21 = vrot.slane %v1045_v13, 4  ;;  %v1037_v25 = vmax.f32 %v1035_v36, %v1036_v24 }
 0x1ef   :  { %v1042_v15 = vmax.f32 %v1040_v16, %v1041_v34  ;;  %v1047_v14 = vmax.f32 %v1045_v13, %v1046_v21  ;;  %v1087_v17 = vsel %vm1086_vm11, %v1037_v25, %v1085_v8 }
 0x1f1   :  { %v1043_v45 = vrot.slane %v1042_v15, 1  ;;  %v1048_v26 = vrot.slane %v1047_v14, 2 }
 0x1f3   :  { %v1044_v46 = vmax.f32 %v1042_v15, %v1043_v45  ;;  %v1049_v48 = vmax.f32 %v1047_v14, %v1048_v26 }
 0x1f5   :  { %v1050_v39 = vrot.slane %v1049_v48, 1  ;;  %v1088_v28 = vsel %vm96_vm3, %v1044_v46, %v1087_v17 }
 0x1f7   :  { %v1051_v35 = vmax.f32 %v1049_v48, %v1050_v39 }
 0x1f9   :  { %v1090_v32 = vsel %vm1089_vm12, %v1051_v35, %v1088_v28 }
 0x1fa   :  { %1108 = vmatmul.f32.vlgmr.msrb.gmra.mxu1 %v1090_v32 }
 0x277   :  { %v1109_v6 = vpop.f32.mrf.mxu1 }
 0x278   :  { %v1110_v22 = vadd.f32 %v1191_v57, %v1109_v6 }
 0x27a   :  { %1112 = vmax.xlane.f32.xlu0 %v1110_v22 }
 0x2ed   :  { %v1113_v33 = vpop.xlane.xlu0 %1112 }
 0x2ee   :  { %v1114_v62 = vsub.f32 %v1110_v22, %v1113_v33 }
 0x2f0   :  { %v1115_v63 = vmul.f32 1.442695, %v1114_v62 }
 0x2f2   :  { %1192 = vpow2.f32 %v1115_v63 }
 0x2f8   :  { %v1193_v0 = vpop.eup %1192 }
 0x2f9   :  { %1117 = vadd.xlane.f32.xlu0 %v1193_v0 }
 0x36c   :  { %v1118_v40 = vpop.xlane.xlu0 %1117 }
 0x36d   :  { %1194 = vlog2.f32 %v1118_v40 }
 0x373   :  { %v1195_v23 = vpop.eup %1194 }
 0x374   :  { %v1120_v9 = vmul.f32 0.6931472, %v1195_v23 }
 0x376   :  { %v1121_v54 = vadd.f32 %v1120_v9, %v1113_v33 }
 0x378   :  { %v1122_v50 = vsub.f32 %v1110_v22, %v1121_v54 }
 0x37a   :  { %1123 = vst [vmem:[%s1907_s6] sm:$0xff] %v1122_v50 }

</bundles_post_ra>
